<compile_context>
chip_gen: v6e
topology: v6e:2x2x1
jax: 0.10.0
libtpu: 0.0.40
codegen_flags: <defaults>
</compile_context>

<pallas_src>
import math
from functools import partial

import jax
import jax.numpy as jnp
from jax import lax
from jax.experimental import pallas as pl
from jax.experimental.pallas import tpu as pltpu


def _round_up(x, m):
    return ((x + m - 1) // m) * m


def _vmem_capacity_bytes():
    """Trace-time VMEM capacity query with a conservative (v7x) fallback."""
    try:
        info = pltpu.get_tpu_info()
        cap = getattr(info, "vmem_capacity_bytes", None)
        if cap:
            return int(cap)
    except Exception:
        pass
    return 64 * 1024 * 1024


def _gru_kernel(px_ref, wzr_ref, ws_ref, out_ref, h_ref):
    """px_ref : (TT, TB, 3Hp) f32  precomputed x-projection (+bias) [z|r|s]
    wzr_ref: (Hp, 2Hp)           fused hidden weights for z,r (bf16 or f32)
    ws_ref : (Hp, Hp)            candidate-state hidden weights
    out_ref: (TB, TT, Hp) f32    batch-major output block
    h_ref  : (TB, Hp) f32        hidden state carried across the time grid."""
    # grid = (batch_blocks, time_blocks); reset h at the first time block.
    @pl.when(pl.program_id(1) == 0)
    def _():
        h_ref[...] = jnp.zeros_like(h_ref)

    TT = px_ref.shape[0]
    Hp = h_ref.shape[1]
    w_dtype = wzr_ref.dtype

    def step(t, h):
        px = px_ref[t]                                         # (TB, 3Hp) f32
        # z and r gates: one fused MXU push on the hidden state.
        zr = jax.nn.sigmoid(
            px[:, : 2 * Hp]
            + jnp.dot(h.astype(w_dtype), wzr_ref[...],
                      preferred_element_type=jnp.float32))
        z = zr[:, :Hp]
        r = zr[:, Hp:]
        # candidate state: second MXU push (needs r*h).
        h_t = jnp.tanh(
            px[:, 2 * Hp:]
            + jnp.dot((r * h).astype(w_dtype), ws_ref[...],
                      preferred_element_type=jnp.float32))
        h_new = h + z * (h_t - h)                              # (1-z)*h + z*h_t
        # Batch-major store: lane-dense (last dim Hp, multiple of 128);
        # off the h critical path, so the sublane-masked write is hidden.
        out_ref[:, pl.ds(t, 1), :] = h_new[:, None, :].astype(out_ref.dtype)
        return h_new

    # Bounded partial unroll: keeps LLO scheduling visibility without blowing
    # up code size / vreg pressure at large TT.
    h_ref[...] = lax.fori_loop(0, TT, step, h_ref[...],
                               unroll=(TT if TT <= 8 else 8))


@partial(jax.jit, static_argnames=("matmul_dtype", "time_block"))
def encoder_forward(embedding_bte, params, *, matmul_dtype=jnp.bfloat16,
                    time_block=None):
    """Encoder.forward: embedding [B, T, E] -> hidden_states [B, T, H]."""
    B, T, E = embedding_bte.shape
    H = params["wzh"].shape[0]

    # ---- batch / hidden padding (sublane 8, lane 128) ----
    Bp = _round_up(B, 8)
    if Bp >= 512:                      # only split batch when it is large
        Bp = _round_up(Bp, 256)
        TB = 256
    else:
        TB = Bp                        # keep whole batch in a single MXU push
    nB = Bp // TB
    Hp = _round_up(H, 128)
    use_bf16 = jnp.dtype(matmul_dtype) == jnp.dtype(jnp.bfloat16)
    w_dtype = jnp.bfloat16 if use_bf16 else jnp.float32

    # ---- VMEM-budgeted time block (64 MiB on v7x, 128 MiB on v5e/v6e) ----
    cap = _vmem_capacity_bytes()
    vmem_limit = max(16 << 20, min(int(cap * 0.7), 100 << 20))
    w_bytes = 2 * (Hp * 2 * Hp + Hp * Hp) * jnp.dtype(w_dtype).itemsize
    budget = vmem_limit - w_bytes - TB * Hp * 4 - (4 << 20)
    per_tt = 2 * TB * 3 * Hp * 4 + 2 * TB * Hp * 4   # double-buffered px + out
    if time_block is not None:
        TT = _round_up(int(time_block), 8)
    else:
        TT = max(8, min(256, (budget // per_tt) // 8 * 8))
        TT = min(TT, _round_up(T, 8))
    Tp = _round_up(T, TT)

    # ---- input-projection weights, padded to lane width per gate ----
    def pad_cols(w):                                  # [E, H] -> [E, Hp]
        return jnp.pad(w, ((0, 0), (0, Hp - H)))

    def pad_bias(b):                                  # [1, H] -> [1, Hp]
        return jnp.pad(b, ((0, 0), (0, Hp - H)))

    wx = jnp.concatenate([pad_cols(params["wzx"]), pad_cols(params["wrx"]),
                          pad_cols(params["wsx"])], axis=1)        # [E, 3Hp]
    bx = jnp.concatenate([pad_bias(params["bz"]), pad_bias(params["br"]),
                          pad_bias(params["bs"])], axis=1)         # [1, 3Hp]

    # ---- hoisted input projection: pad the SMALL embedding, not px ----
    emb = jnp.pad(embedding_bte, ((0, Bp - B), (0, Tp - T), (0, 0)))  # [Bp,Tp,E]
    emb_t = jnp.transpose(emb, (1, 0, 2))                             # [Tp,Bp,E]
    if use_bf16:
        px = jnp.einsum("tbe,eg->tbg", emb_t.astype(jnp.bfloat16),
                        wx.astype(jnp.bfloat16),
                        preferred_element_type=jnp.float32) + bx
    else:
        px = jnp.einsum("tbe,eg->tbg", emb_t, wx,
                        precision=lax.Precision.DEFAULT,
                        preferred_element_type=jnp.float32) + bx
    # px: [Tp, Bp, 3Hp] f32, already lane/sublane dense (padded cols are 0).

    # ---- hidden-state weights: zero-padded, z/r fused, MXU-operand dtype ----
    def pad_w(w):                                     # [H, H] -> [Hp, Hp]
        return jnp.pad(w, ((0, Hp - H), (0, Hp - H)))

    wzr = jnp.concatenate([pad_w(params["wzh"]), pad_w(params["wrh"])],
                          axis=1).astype(w_dtype)     # [Hp, 2Hp]
    ws = pad_w(params["wsh"]).astype(w_dtype)         # [Hp, Hp]
    # (Zero padding keeps padded hidden columns exactly 0 through the
    #  recurrence: h_t_pad = tanh(0) = 0, so h_pad stays 0 in any dtype.)
    # Note: on v7x at very large H, the grid-invariant weight inputs could be
    # single-buffered (pipeline_mode=pl.Buffered(1)) to save VMEM; negligible
    # at these sizes, so left at the default.

    out = pl.pallas_call(
        _gru_kernel,
        out_shape=jax.ShapeDtypeStruct((Bp, Tp, Hp), jnp.float32),
        grid_spec=pltpu.PrefetchScalarGridSpec(
            num_scalar_prefetch=0,
            grid=(nB, Tp // TT),
            in_specs=[
                pl.BlockSpec((TT, TB, 3 * Hp), lambda b, t: (t, b, 0)),  # px slab
                pl.BlockSpec((Hp, 2 * Hp), lambda b, t: (0, 0)),         # fused z/r W
                pl.BlockSpec((Hp, Hp), lambda b, t: (0, 0)),             # candidate W
            ],
            out_specs=pl.BlockSpec((TB, TT, Hp), lambda b, t: (b, t, 0)),
            scratch_shapes=[pltpu.VMEM((TB, Hp), jnp.float32)],
        ),
        compiler_params=pltpu.CompilerParams(
            # batch blocks independent (megacore on v7x); time is a recurrence
            dimension_semantics=("parallel", "arbitrary"),
            vmem_limit_bytes=vmem_limit),
    )(px, wzr, ws)

    # Batch-major already; just slice off padding.  Matches torch.stack(dim=1).
    return out[:B, :T, :H]


def init_gru_params(key, embedding_size, hidden_size):
    """Deterministic init mimicking nn.Linear default (uniform ±1/sqrt(fan_in))."""
    E, H = embedding_size, hidden_size
    bound = 1.0 / math.sqrt(E + H)
    keys = jax.random.split(key, 6)
    params = {}
    for name, (kw, kb) in zip(("z", "r", "s"),
                              [(keys[0], keys[1]), (keys[2], keys[3]),
                               (keys[4], keys[5])]):
        W = jax.random.uniform(kw, (H, E + H), jnp.float32, -bound, bound)
        b = jax.random.uniform(kb, (1, H), jnp.float32, -bound, bound)
        params["w%sx" % name] = jnp.transpose(W[:, :E])    # [E, H]
        params["w%sh" % name] = jnp.transpose(W[:, E:])    # [H, H]
        params["b%s" % name] = b                           # [1, H]
    return params


def encoder_forward_ref(embedding_bte, params):
    """Pure-JAX reference mirroring the PyTorch loop (for validation)."""
    hi = lax.Precision.HIGHEST
    emb_tbe = jnp.transpose(embedding_bte, (1, 0, 2))
    T, B, E = emb_tbe.shape
    H = params["wzh"].shape[0]
    h0 = jnp.zeros((B, H), jnp.float32)

    def step(h, x):
        z = jax.nn.sigmoid(jnp.dot(x, params["wzx"], precision=hi)
                           + jnp.dot(h, params["wzh"], precision=hi) + params["bz"])
        r = jax.nn.sigmoid(jnp.dot(x, params["wrx"], precision=hi)
                           + jnp.dot(h, params["wrh"], precision=hi) + params["br"])
        h_t = jnp.tanh(jnp.dot(x, params["wsx"], precision=hi)
                       + jnp.dot(r * h, params["wsh"], precision=hi) + params["bs"])
        h_new = (1.0 - z) * h + z * h_t
        return h_new, h_new

    _, out_tbh = lax.scan(step, h0, emb_tbe)
    return jnp.transpose(out_tbh, (1, 0, 2))


# TODO(synk): LSTM branch of Encoder (mode != 'GRU') not implemented; default GRU path only.

if __name__ == "__main__":
    E, H = 32, 32
    key = jax.random.PRNGKey(0)
    k1, k2, k3, kp = jax.random.split(key, 4)
    params = init_gru_params(kp, E, H)

    # Test 1: f32 MXU-operand path, auto time block (single grid step).
    B, T = 4, 8
    emb1 = jax.random.normal(k1, (B, T, E), jnp.float32)
    out1 = jax.block_until_ready(
        encoder_forward(emb1, params, matmul_dtype=jnp.float32))
    ref1 = encoder_forward_ref(emb1, params)
    assert out1.shape == (B, T, H)
    assert jnp.allclose(out1, ref1, atol=1e-4, rtol=1e-4), "mismatch (f32, T=8)"

    # Test 2: f32 path, forced TT=8 -> 3 time blocks, exercises the
    # cross-block hidden-state carry in VMEM scratch.
    B2, T2 = 4, 24
    emb2 = jax.random.normal(k2, (B2, T2, E), jnp.float32)
    out2 = jax.block_until_ready(
        encoder_forward(emb2, params, matmul_dtype=jnp.float32, time_block=8))
    ref2 = encoder_forward_ref(emb2, params)
    assert out2.shape == (B2, T2, H)
    assert jnp.allclose(out2, ref2, atol=1e-4, rtol=1e-4), "mismatch (f32, T=24)"

    # Test 3: default bf16 MXU-operand path (f32 accumulate / elementwise),
    # odd B and T -> exercises batch padding, time padding and the carry.
    B3, T3 = 3, 13
    emb3 = jax.random.normal(k3, (B3, T3, E), jnp.float32)
    out3 = jax.block_until_ready(encoder_forward(emb3, params, time_block=8))
    ref3 = encoder_forward_ref(emb3, params)
    assert out3.shape == (B3, T3, H)
    assert jnp.allclose(out3, ref3, atol=3e-2, rtol=3e-2), "mismatch (bf16, T=13)"

    print("KERNEL_OK")
</pallas_src>

<mosaic_0001>
module attributes {stable_mosaic.version = 11 : i64} {
  func.func @_gru_kernel(%arg0: i32, %arg1: i32, %arg2: memref<8x8x384xf32, #tpu.memory_space<vmem>>, %arg3: memref<128x256xf32, #tpu.memory_space<vmem>>, %arg4: memref<128x128xf32, #tpu.memory_space<vmem>>, %arg5: memref<8x8x128xf32, #tpu.memory_space<vmem>>, %arg6: memref<8x128xf32, #tpu.memory_space<vmem>>) attributes {dimension_semantics = [#tpu.dimension_semantics<parallel>, #tpu.dimension_semantics<arbitrary>], iteration_bounds = array<i64: 1, 1>, scalar_prefetch = 0 : i64, scratch_operands = 1 : i64, tpu.core_type = #tpu.core_type<tc>, window_params = [{transform_indices = @transform_0, window_bounds = array<i64: 8, 8, 384>}, {pipeline_mode = #tpu.pipeline_mode<synchronous>, transform_indices = @transform_1, window_bounds = array<i64: 128, 256>}, {pipeline_mode = #tpu.pipeline_mode<synchronous>, transform_indices = @transform_2, window_bounds = array<i64: 128, 128>}, {transform_indices = @transform_3, window_bounds = array<i64: 8, 8, 128>}]} {
    %c0_i32 = arith.constant 0 : i32
    %0 = arith.cmpi eq, %arg1, %c0_i32 : i32
    %1 = arith.extui %0 : i1 to i32
    %c0_i32_0 = arith.constant 0 : i32
    %2 = arith.cmpi ne, %1, %c0_i32_0 : i32
    scf.if %2 {
      %cst_92 = arith.constant 0.000000e+00 : f32
      %213 = vector.broadcast %cst_92 : f32 to vector<8x128xf32>
      %c0_93 = arith.constant 0 : index
      %c0_94 = arith.constant 0 : index
      %214 = vector.load %arg6[%c0_93, %c0_94] : memref<8x128xf32, #tpu.memory_space<vmem>>, vector<8x128xf32>
      tpu.vector_store %arg6[%c0_93, %c0_94], %213 {strides = array<i32>} : memref<8x128xf32, #tpu.memory_space<vmem>>, vector<8x128xf32>,
    } else {
    }
    %c0 = arith.constant 0 : index
    %c0_1 = arith.constant 0 : index
    %3 = vector.load %arg6[%c0, %c0_1] : memref<8x128xf32, #tpu.memory_space<vmem>>, vector<8x128xf32>
    %c0_i32_2 = arith.constant 0 : i32
    %4 = arith.index_cast %c0_i32_2 : i32 to index
    %c0_3 = arith.constant 0 : index
    %c0_4 = arith.constant 0 : index
    %5 = vector.load %arg2[%4, %c0_3, %c0_4] : memref<8x8x384xf32, #tpu.memory_space<vmem>>, vector<1x8x384xf32>
    %6 = vector.shape_cast %5 : vector<1x8x384xf32> to vector<8x384xf32>
    %7 = vector.extract_strided_slice %6 {offsets = [0, 0], sizes = [8, 256], strides = [1, 1]} : vector<8x384xf32> to vector<8x256xf32>
    %c0_5 = arith.constant 0 : index
    %c0_6 = arith.constant 0 : index
    %8 = vector.load %arg3[%c0_5, %c0_6] : memref<128x256xf32, #tpu.memory_space<vmem>>, vector<128x256xf32>
    %cst = arith.constant dense<0.000000e+00> : vector<8x256xf32>
    %9 = tpu.matmul %3, %8, %cst {dimension_numbers = #tpu.dot_dimension_numbers<[1], [0], [0], [1], [0, 0, 1, 1], [], []>} : vector<8x128xf32>, vector<128x256xf32>, vector<8x256xf32> -> vector<8x256xf32>
    %10 = arith.addf %7, %9 : vector<8x256xf32>
    %11 = arith.negf %10 : vector<8x256xf32>
    %12 = math.exp %11 : vector<8x256xf32>
    %cst_7 = arith.constant 1.000000e+00 : f32
    %13 = vector.broadcast %cst_7 : f32 to vector<8x256xf32>
    %14 = arith.addf %13, %12 : vector<8x256xf32>
    %15 = arith.divf %13, %14 : vector<8x256xf32>
    %16 = vector.extract_strided_slice %15 {offsets = [0, 0], sizes = [8, 128], strides = [1, 1]} : vector<8x256xf32> to vector<8x128xf32>
    %17 = vector.extract_strided_slice %15 {offsets = [0, 128], sizes = [8, 128], strides = [1, 1]} : vector<8x256xf32> to vector<8x128xf32>
    %18 = vector.extract_strided_slice %6 {offsets = [0, 256], sizes = [8, 128], strides = [1, 1]} : vector<8x384xf32> to vector<8x128xf32>
    %19 = arith.mulf %17, %3 : vector<8x128xf32>
    %c0_8 = arith.constant 0 : index
    %c0_9 = arith.constant 0 : index
    %20 = vector.load %arg4[%c0_8, %c0_9] : memref<128x128xf32, #tpu.memory_space<vmem>>, vector<128x128xf32>
    %cst_10 = arith.constant dense<0.000000e+00> : vector<8x128xf32>
    %21 = tpu.matmul %19, %20, %cst_10 {dimension_numbers = #tpu.dot_dimension_numbers<[1], [0], [0], [1], [0, 0, 1, 1], [], []>} : vector<8x128xf32>, vector<128x128xf32>, vector<8x128xf32> -> vector<8x128xf32>
    %22 = arith.addf %18, %21 : vector<8x128xf32>
    %23 = math.tanh %22 : vector<8x128xf32>
    %24 = arith.subf %23, %3 : vector<8x128xf32>
    %25 = arith.mulf %16, %24 : vector<8x128xf32>
    %26 = arith.addf %3, %25 : vector<8x128xf32>
    %27 = vector.shape_cast %26 : vector<8x128xf32> to vector<8x1x128xf32>
    %c0_11 = arith.constant 0 : index
    %28 = arith.index_cast %c0_i32_2 : i32 to index
    %c0_12 = arith.constant 0 : index
    %29 = vector.load %arg5[%c0_11, %28, %c0_12] : memref<8x8x128xf32, #tpu.memory_space<vmem>>, vector<8x1x128xf32>
    tpu.vector_store %arg5[%c0_11, %28, %c0_12], %27 {strides = array<i32>} : memref<8x8x128xf32, #tpu.memory_space<vmem>>, vector<8x1x128xf32>,
    %c1_i32 = arith.constant 1 : i32
    %30 = arith.index_cast %c1_i32 : i32 to index
    %c0_13 = arith.constant 0 : index
    %c0_14 = arith.constant 0 : index
    %31 = vector.load %arg2[%30, %c0_13, %c0_14] : memref<8x8x384xf32, #tpu.memory_space<vmem>>, vector<1x8x384xf32>
    %32 = vector.shape_cast %31 : vector<1x8x384xf32> to vector<8x384xf32>
    %33 = vector.extract_strided_slice %32 {offsets = [0, 0], sizes = [8, 256], strides = [1, 1]} : vector<8x384xf32> to vector<8x256xf32>
    %c0_15 = arith.constant 0 : index
    %c0_16 = arith.constant 0 : index
    %34 = vector.load %arg3[%c0_15, %c0_16] : memref<128x256xf32, #tpu.memory_space<vmem>>, vector<128x256xf32>
    %cst_17 = arith.constant dense<0.000000e+00> : vector<8x256xf32>
    %35 = tpu.matmul %26, %34, %cst_17 {dimension_numbers = #tpu.dot_dimension_numbers<[1], [0], [0], [1], [0, 0, 1, 1], [], []>} : vector<8x128xf32>, vector<128x256xf32>, vector<8x256xf32> -> vector<8x256xf32>
    %36 = arith.addf %33, %35 : vector<8x256xf32>
    %37 = arith.negf %36 : vector<8x256xf32>
    %38 = math.exp %37 : vector<8x256xf32>
    %cst_18 = arith.constant 1.000000e+00 : f32
    %39 = vector.broadcast %cst_18 : f32 to vector<8x256xf32>
    %40 = arith.addf %39, %38 : vector<8x256xf32>
    %41 = arith.divf %39, %40 : vector<8x256xf32>
    %42 = vector.extract_strided_slice %41 {offsets = [0, 0], sizes = [8, 128], strides = [1, 1]} : vector<8x256xf32> to vector<8x128xf32>
    %43 = vector.extract_strided_slice %41 {offsets = [0, 128], sizes = [8, 128], strides = [1, 1]} : vector<8x256xf32> to vector<8x128xf32>
    %44 = vector.extract_strided_slice %32 {offsets = [0, 256], sizes = [8, 128], strides = [1, 1]} : vector<8x384xf32> to vector<8x128xf32>
    %45 = arith.mulf %43, %26 : vector<8x128xf32>
    %c0_19 = arith.constant 0 : index
    %c0_20 = arith.constant 0 : index
    %46 = vector.load %arg4[%c0_19, %c0_20] : memref<128x128xf32, #tpu.memory_space<vmem>>, vector<128x128xf32>
    %cst_21 = arith.constant dense<0.000000e+00> : vector<8x128xf32>
    %47 = tpu.matmul %45, %46, %cst_21 {dimension_numbers = #tpu.dot_dimension_numbers<[1], [0], [0], [1], [0, 0, 1, 1], [], []>} : vector<8x128xf32>, vector<128x128xf32>, vector<8x128xf32> -> vector<8x128xf32>
    %48 = arith.addf %44, %47 : vector<8x128xf32>
    %49 = math.tanh %48 : vector<8x128xf32>
    %50 = arith.subf %49, %26 : vector<8x128xf32>
    %51 = arith.mulf %42, %50 : vector<8x128xf32>
    %52 = arith.addf %26, %51 : vector<8x128xf32>
    %53 = vector.shape_cast %52 : vector<8x128xf32> to vector<8x1x128xf32>
    %c0_22 = arith.constant 0 : index
    %54 = arith.index_cast %c1_i32 : i32 to index
    %c0_23 = arith.constant 0 : index
    %55 = vector.load %arg5[%c0_22, %54, %c0_23] : memref<8x8x128xf32, #tpu.memory_space<vmem>>, vector<8x1x128xf32>
    tpu.vector_store %arg5[%c0_22, %54, %c0_23], %53 {strides = array<i32>} : memref<8x8x128xf32, #tpu.memory_space<vmem>>, vector<8x1x128xf32>,
    %c2_i32 = arith.constant 2 : i32
    %56 = arith.index_cast %c2_i32 : i32 to index
    %c0_24 = arith.constant 0 : index
    %c0_25 = arith.constant 0 : index
    %57 = vector.load %arg2[%56, %c0_24, %c0_25] : memref<8x8x384xf32, #tpu.memory_space<vmem>>, vector<1x8x384xf32>
    %58 = vector.shape_cast %57 : vector<1x8x384xf32> to vector<8x384xf32>
    %59 = vector.extract_strided_slice %58 {offsets = [0, 0], sizes = [8, 256], strides = [1, 1]} : vector<8x384xf32> to vector<8x256xf32>
    %c0_26 = arith.constant 0 : index
    %c0_27 = arith.constant 0 : index
    %60 = vector.load %arg3[%c0_26, %c0_27] : memref<128x256xf32, #tpu.memory_space<vmem>>, vector<128x256xf32>
    %cst_28 = arith.constant dense<0.000000e+00> : vector<8x256xf32>
    %61 = tpu.matmul %52, %60, %cst_28 {dimension_numbers = #tpu.dot_dimension_numbers<[1], [0], [0], [1], [0, 0, 1, 1], [], []>} : vector<8x128xf32>, vector<128x256xf32>, vector<8x256xf32> -> vector<8x256xf32>
    %62 = arith.addf %59, %61 : vector<8x256xf32>
    %63 = arith.negf %62 : vector<8x256xf32>
    %64 = math.exp %63 : vector<8x256xf32>
    %cst_29 = arith.constant 1.000000e+00 : f32
    %65 = vector.broadcast %cst_29 : f32 to vector<8x256xf32>
    %66 = arith.addf %65, %64 : vector<8x256xf32>
    %67 = arith.divf %65, %66 : vector<8x256xf32>
    %68 = vector.extract_strided_slice %67 {offsets = [0, 0], sizes = [8, 128], strides = [1, 1]} : vector<8x256xf32> to vector<8x128xf32>
    %69 = vector.extract_strided_slice %67 {offsets = [0, 128], sizes = [8, 128], strides = [1, 1]} : vector<8x256xf32> to vector<8x128xf32>
    %70 = vector.extract_strided_slice %58 {offsets = [0, 256], sizes = [8, 128], strides = [1, 1]} : vector<8x384xf32> to vector<8x128xf32>
    %71 = arith.mulf %69, %52 : vector<8x128xf32>
    %c0_30 = arith.constant 0 : index
    %c0_31 = arith.constant 0 : index
    %72 = vector.load %arg4[%c0_30, %c0_31] : memref<128x128xf32, #tpu.memory_space<vmem>>, vector<128x128xf32>
    %cst_32 = arith.constant dense<0.000000e+00> : vector<8x128xf32>
    %73 = tpu.matmul %71, %72, %cst_32 {dimension_numbers = #tpu.dot_dimension_numbers<[1], [0], [0], [1], [0, 0, 1, 1], [], []>} : vector<8x128xf32>, vector<128x128xf32>, vector<8x128xf32> -> vector<8x128xf32>
    %74 = arith.addf %70, %73 : vector<8x128xf32>
    %75 = math.tanh %74 : vector<8x128xf32>
    %76 = arith.subf %75, %52 : vector<8x128xf32>
    %77 = arith.mulf %68, %76 : vector<8x128xf32>
    %78 = arith.addf %52, %77 : vector<8x128xf32>
    %79 = vector.shape_cast %78 : vector<8x128xf32> to vector<8x1x128xf32>
    %c0_33 = arith.constant 0 : index
    %80 = arith.index_cast %c2_i32 : i32 to index
    %c0_34 = arith.constant 0 : index
    %81 = vector.load %arg5[%c0_33, %80, %c0_34] : memref<8x8x128xf32, #tpu.memory_space<vmem>>, vector<8x1x128xf32>
    tpu.vector_store %arg5[%c0_33, %80, %c0_34], %79 {strides = array<i32>} : memref<8x8x128xf32, #tpu.memory_space<vmem>>, vector<8x1x128xf32>,
    %c3_i32 = arith.constant 3 : i32
    %82 = arith.index_cast %c3_i32 : i32 to index
    %c0_35 = arith.constant 0 : index
    %c0_36 = arith.constant 0 : index
    %83 = vector.load %arg2[%82, %c0_35, %c0_36] : memref<8x8x384xf32, #tpu.memory_space<vmem>>, vector<1x8x384xf32>
    %84 = vector.shape_cast %83 : vector<1x8x384xf32> to vector<8x384xf32>
    %85 = vector.extract_strided_slice %84 {offsets = [0, 0], sizes = [8, 256], strides = [1, 1]} : vector<8x384xf32> to vector<8x256xf32>
    %c0_37 = arith.constant 0 : index
    %c0_38 = arith.constant 0 : index
    %86 = vector.load %arg3[%c0_37, %c0_38] : memref<128x256xf32, #tpu.memory_space<vmem>>, vector<128x256xf32>
    %cst_39 = arith.constant dense<0.000000e+00> : vector<8x256xf32>
    %87 = tpu.matmul %78, %86, %cst_39 {dimension_numbers = #tpu.dot_dimension_numbers<[1], [0], [0], [1], [0, 0, 1, 1], [], []>} : vector<8x128xf32>, vector<128x256xf32>, vector<8x256xf32> -> vector<8x256xf32>
    %88 = arith.addf %85, %87 : vector<8x256xf32>
    %89 = arith.negf %88 : vector<8x256xf32>
    %90 = math.exp %89 : vector<8x256xf32>
    %cst_40 = arith.constant 1.000000e+00 : f32
    %91 = vector.broadcast %cst_40 : f32 to vector<8x256xf32>
    %92 = arith.addf %91, %90 : vector<8x256xf32>
    %93 = arith.divf %91, %92 : vector<8x256xf32>
    %94 = vector.extract_strided_slice %93 {offsets = [0, 0], sizes = [8, 128], strides = [1, 1]} : vector<8x256xf32> to vector<8x128xf32>
    %95 = vector.extract_strided_slice %93 {offsets = [0, 128], sizes = [8, 128], strides = [1, 1]} : vector<8x256xf32> to vector<8x128xf32>
    %96 = vector.extract_strided_slice %84 {offsets = [0, 256], sizes = [8, 128], strides = [1, 1]} : vector<8x384xf32> to vector<8x128xf32>
    %97 = arith.mulf %95, %78 : vector<8x128xf32>
    %c0_41 = arith.constant 0 : index
    %c0_42 = arith.constant 0 : index
    %98 = vector.load %arg4[%c0_41, %c0_42] : memref<128x128xf32, #tpu.memory_space<vmem>>, vector<128x128xf32>
    %cst_43 = arith.constant dense<0.000000e+00> : vector<8x128xf32>
    %99 = tpu.matmul %97, %98, %cst_43 {dimension_numbers = #tpu.dot_dimension_numbers<[1], [0], [0], [1], [0, 0, 1, 1], [], []>} : vector<8x128xf32>, vector<128x128xf32>, vector<8x128xf32> -> vector<8x128xf32>
    %100 = arith.addf %96, %99 : vector<8x128xf32>
    %101 = math.tanh %100 : vector<8x128xf32>
    %102 = arith.subf %101, %78 : vector<8x128xf32>
    %103 = arith.mulf %94, %102 : vector<8x128xf32>
    %104 = arith.addf %78, %103 : vector<8x128xf32>
    %105 = vector.shape_cast %104 : vector<8x128xf32> to vector<8x1x128xf32>
    %c0_44 = arith.constant 0 : index
    %106 = arith.index_cast %c3_i32 : i32 to index
    %c0_45 = arith.constant 0 : index
    %107 = vector.load %arg5[%c0_44, %106, %c0_45] : memref<8x8x128xf32, #tpu.memory_space<vmem>>, vector<8x1x128xf32>
    tpu.vector_store %arg5[%c0_44, %106, %c0_45], %105 {strides = array<i32>} : memref<8x8x128xf32, #tpu.memory_space<vmem>>, vector<8x1x128xf32>,
    %c4_i32 = arith.constant 4 : i32
    %108 = arith.index_cast %c4_i32 : i32 to index
    %c0_46 = arith.constant 0 : index
    %c0_47 = arith.constant 0 : index
    %109 = vector.load %arg2[%108, %c0_46, %c0_47] : memref<8x8x384xf32, #tpu.memory_space<vmem>>, vector<1x8x384xf32>
    %110 = vector.shape_cast %109 : vector<1x8x384xf32> to vector<8x384xf32>
    %111 = vector.extract_strided_slice %110 {offsets = [0, 0], sizes = [8, 256], strides = [1, 1]} : vector<8x384xf32> to vector<8x256xf32>
    %c0_48 = arith.constant 0 : index
    %c0_49 = arith.constant 0 : index
    %112 = vector.load %arg3[%c0_48, %c0_49] : memref<128x256xf32, #tpu.memory_space<vmem>>, vector<128x256xf32>
    %cst_50 = arith.constant dense<0.000000e+00> : vector<8x256xf32>
    %113 = tpu.matmul %104, %112, %cst_50 {dimension_numbers = #tpu.dot_dimension_numbers<[1], [0], [0], [1], [0, 0, 1, 1], [], []>} : vector<8x128xf32>, vector<128x256xf32>, vector<8x256xf32> -> vector<8x256xf32>
    %114 = arith.addf %111, %113 : vector<8x256xf32>
    %115 = arith.negf %114 : vector<8x256xf32>
    %116 = math.exp %115 : vector<8x256xf32>
    %cst_51 = arith.constant 1.000000e+00 : f32
    %117 = vector.broadcast %cst_51 : f32 to vector<8x256xf32>
    %118 = arith.addf %117, %116 : vector<8x256xf32>
    %119 = arith.divf %117, %118 : vector<8x256xf32>
    %120 = vector.extract_strided_slice %119 {offsets = [0, 0], sizes = [8, 128], strides = [1, 1]} : vector<8x256xf32> to vector<8x128xf32>
    %121 = vector.extract_strided_slice %119 {offsets = [0, 128], sizes = [8, 128], strides = [1, 1]} : vector<8x256xf32> to vector<8x128xf32>
    %122 = vector.extract_strided_slice %110 {offsets = [0, 256], sizes = [8, 128], strides = [1, 1]} : vector<8x384xf32> to vector<8x128xf32>
    %123 = arith.mulf %121, %104 : vector<8x128xf32>
    %c0_52 = arith.constant 0 : index
    %c0_53 = arith.constant 0 : index
    %124 = vector.load %arg4[%c0_52, %c0_53] : memref<128x128xf32, #tpu.memory_space<vmem>>, vector<128x128xf32>
    %cst_54 = arith.constant dense<0.000000e+00> : vector<8x128xf32>
    %125 = tpu.matmul %123, %124, %cst_54 {dimension_numbers = #tpu.dot_dimension_numbers<[1], [0], [0], [1], [0, 0, 1, 1], [], []>} : vector<8x128xf32>, vector<128x128xf32>, vector<8x128xf32> -> vector<8x128xf32>
    %126 = arith.addf %122, %125 : vector<8x128xf32>
    %127 = math.tanh %126 : vector<8x128xf32>
    %128 = arith.subf %127, %104 : vector<8x128xf32>
    %129 = arith.mulf %120, %128 : vector<8x128xf32>
    %130 = arith.addf %104, %129 : vector<8x128xf32>
    %131 = vector.shape_cast %130 : vector<8x128xf32> to vector<8x1x128xf32>
    %c0_55 = arith.constant 0 : index
    %132 = arith.index_cast %c4_i32 : i32 to index
    %c0_56 = arith.constant 0 : index
    %133 = vector.load %arg5[%c0_55, %132, %c0_56] : memref<8x8x128xf32, #tpu.memory_space<vmem>>, vector<8x1x128xf32>
    tpu.vector_store %arg5[%c0_55, %132, %c0_56], %131 {strides = array<i32>} : memref<8x8x128xf32, #tpu.memory_space<vmem>>, vector<8x1x128xf32>,
    %c5_i32 = arith.constant 5 : i32
    %134 = arith.index_cast %c5_i32 : i32 to index
    %c0_57 = arith.constant 0 : index
    %c0_58 = arith.constant 0 : index
    %135 = vector.load %arg2[%134, %c0_57, %c0_58] : memref<8x8x384xf32, #tpu.memory_space<vmem>>, vector<1x8x384xf32>
    %136 = vector.shape_cast %135 : vector<1x8x384xf32> to vector<8x384xf32>
    %137 = vector.extract_strided_slice %136 {offsets = [0, 0], sizes = [8, 256], strides = [1, 1]} : vector<8x384xf32> to vector<8x256xf32>
    %c0_59 = arith.constant 0 : index
    %c0_60 = arith.constant 0 : index
    %138 = vector.load %arg3[%c0_59, %c0_60] : memref<128x256xf32, #tpu.memory_space<vmem>>, vector<128x256xf32>
    %cst_61 = arith.constant dense<0.000000e+00> : vector<8x256xf32>
    %139 = tpu.matmul %130, %138, %cst_61 {dimension_numbers = #tpu.dot_dimension_numbers<[1], [0], [0], [1], [0, 0, 1, 1], [], []>} : vector<8x128xf32>, vector<128x256xf32>, vector<8x256xf32> -> vector<8x256xf32>
    %140 = arith.addf %137, %139 : vector<8x256xf32>
    %141 = arith.negf %140 : vector<8x256xf32>
    %142 = math.exp %141 : vector<8x256xf32>
    %cst_62 = arith.constant 1.000000e+00 : f32
    %143 = vector.broadcast %cst_62 : f32 to vector<8x256xf32>
    %144 = arith.addf %143, %142 : vector<8x256xf32>
    %145 = arith.divf %143, %144 : vector<8x256xf32>
    %146 = vector.extract_strided_slice %145 {offsets = [0, 0], sizes = [8, 128], strides = [1, 1]} : vector<8x256xf32> to vector<8x128xf32>
    %147 = vector.extract_strided_slice %145 {offsets = [0, 128], sizes = [8, 128], strides = [1, 1]} : vector<8x256xf32> to vector<8x128xf32>
    %148 = vector.extract_strided_slice %136 {offsets = [0, 256], sizes = [8, 128], strides = [1, 1]} : vector<8x384xf32> to vector<8x128xf32>
    %149 = arith.mulf %147, %130 : vector<8x128xf32>
    %c0_63 = arith.constant 0 : index
    %c0_64 = arith.constant 0 : index
    %150 = vector.load %arg4[%c0_63, %c0_64] : memref<128x128xf32, #tpu.memory_space<vmem>>, vector<128x128xf32>
    %cst_65 = arith.constant dense<0.000000e+00> : vector<8x128xf32>
    %151 = tpu.matmul %149, %150, %cst_65 {dimension_numbers = #tpu.dot_dimension_numbers<[1], [0], [0], [1], [0, 0, 1, 1], [], []>} : vector<8x128xf32>, vector<128x128xf32>, vector<8x128xf32> -> vector<8x128xf32>
    %152 = arith.addf %148, %151 : vector<8x128xf32>
    %153 = math.tanh %152 : vector<8x128xf32>
    %154 = arith.subf %153, %130 : vector<8x128xf32>
    %155 = arith.mulf %146, %154 : vector<8x128xf32>
    %156 = arith.addf %130, %155 : vector<8x128xf32>
    %157 = vector.shape_cast %156 : vector<8x128xf32> to vector<8x1x128xf32>
    %c0_66 = arith.constant 0 : index
    %158 = arith.index_cast %c5_i32 : i32 to index
    %c0_67 = arith.constant 0 : index
    %159 = vector.load %arg5[%c0_66, %158, %c0_67] : memref<8x8x128xf32, #tpu.memory_space<vmem>>, vector<8x1x128xf32>
    tpu.vector_store %arg5[%c0_66, %158, %c0_67], %157 {strides = array<i32>} : memref<8x8x128xf32, #tpu.memory_space<vmem>>, vector<8x1x128xf32>,
    %c6_i32 = arith.constant 6 : i32
    %160 = arith.index_cast %c6_i32 : i32 to index
    %c0_68 = arith.constant 0 : index
    %c0_69 = arith.constant 0 : index
    %161 = vector.load %arg2[%160, %c0_68, %c0_69] : memref<8x8x384xf32, #tpu.memory_space<vmem>>, vector<1x8x384xf32>
    %162 = vector.shape_cast %161 : vector<1x8x384xf32> to vector<8x384xf32>
    %163 = vector.extract_strided_slice %162 {offsets = [0, 0], sizes = [8, 256], strides = [1, 1]} : vector<8x384xf32> to vector<8x256xf32>
    %c0_70 = arith.constant 0 : index
    %c0_71 = arith.constant 0 : index
    %164 = vector.load %arg3[%c0_70, %c0_71] : memref<128x256xf32, #tpu.memory_space<vmem>>, vector<128x256xf32>
    %cst_72 = arith.constant dense<0.000000e+00> : vector<8x256xf32>
    %165 = tpu.matmul %156, %164, %cst_72 {dimension_numbers = #tpu.dot_dimension_numbers<[1], [0], [0], [1], [0, 0, 1, 1], [], []>} : vector<8x128xf32>, vector<128x256xf32>, vector<8x256xf32> -> vector<8x256xf32>
    %166 = arith.addf %163, %165 : vector<8x256xf32>
    %167 = arith.negf %166 : vector<8x256xf32>
    %168 = math.exp %167 : vector<8x256xf32>
    %cst_73 = arith.constant 1.000000e+00 : f32
    %169 = vector.broadcast %cst_73 : f32 to vector<8x256xf32>
    %170 = arith.addf %169, %168 : vector<8x256xf32>
    %171 = arith.divf %169, %170 : vector<8x256xf32>
    %172 = vector.extract_strided_slice %171 {offsets = [0, 0], sizes = [8, 128], strides = [1, 1]} : vector<8x256xf32> to vector<8x128xf32>
    %173 = vector.extract_strided_slice %171 {offsets = [0, 128], sizes = [8, 128], strides = [1, 1]} : vector<8x256xf32> to vector<8x128xf32>
    %174 = vector.extract_strided_slice %162 {offsets = [0, 256], sizes = [8, 128], strides = [1, 1]} : vector<8x384xf32> to vector<8x128xf32>
    %175 = arith.mulf %173, %156 : vector<8x128xf32>
    %c0_74 = arith.constant 0 : index
    %c0_75 = arith.constant 0 : index
    %176 = vector.load %arg4[%c0_74, %c0_75] : memref<128x128xf32, #tpu.memory_space<vmem>>, vector<128x128xf32>
    %cst_76 = arith.constant dense<0.000000e+00> : vector<8x128xf32>
    %177 = tpu.matmul %175, %176, %cst_76 {dimension_numbers = #tpu.dot_dimension_numbers<[1], [0], [0], [1], [0, 0, 1, 1], [], []>} : vector<8x128xf32>, vector<128x128xf32>, vector<8x128xf32> -> vector<8x128xf32>
    %178 = arith.addf %174, %177 : vector<8x128xf32>
    %179 = math.tanh %178 : vector<8x128xf32>
    %180 = arith.subf %179, %156 : vector<8x128xf32>
    %181 = arith.mulf %172, %180 : vector<8x128xf32>
    %182 = arith.addf %156, %181 : vector<8x128xf32>
    %183 = vector.shape_cast %182 : vector<8x128xf32> to vector<8x1x128xf32>
    %c0_77 = arith.constant 0 : index
    %184 = arith.index_cast %c6_i32 : i32 to index
    %c0_78 = arith.constant 0 : index
    %185 = vector.load %arg5[%c0_77, %184, %c0_78] : memref<8x8x128xf32, #tpu.memory_space<vmem>>, vector<8x1x128xf32>
    tpu.vector_store %arg5[%c0_77, %184, %c0_78], %183 {strides = array<i32>} : memref<8x8x128xf32, #tpu.memory_space<vmem>>, vector<8x1x128xf32>,
    %c7_i32 = arith.constant 7 : i32
    %186 = arith.index_cast %c7_i32 : i32 to index
    %c0_79 = arith.constant 0 : index
    %c0_80 = arith.constant 0 : index
    %187 = vector.load %arg2[%186, %c0_79, %c0_80] : memref<8x8x384xf32, #tpu.memory_space<vmem>>, vector<1x8x384xf32>
    %188 = vector.shape_cast %187 : vector<1x8x384xf32> to vector<8x384xf32>
    %189 = vector.extract_strided_slice %188 {offsets = [0, 0], sizes = [8, 256], strides = [1, 1]} : vector<8x384xf32> to vector<8x256xf32>
    %c0_81 = arith.constant 0 : index
    %c0_82 = arith.constant 0 : index
    %190 = vector.load %arg3[%c0_81, %c0_82] : memref<128x256xf32, #tpu.memory_space<vmem>>, vector<128x256xf32>
    %cst_83 = arith.constant dense<0.000000e+00> : vector<8x256xf32>
    %191 = tpu.matmul %182, %190, %cst_83 {dimension_numbers = #tpu.dot_dimension_numbers<[1], [0], [0], [1], [0, 0, 1, 1], [], []>} : vector<8x128xf32>, vector<128x256xf32>, vector<8x256xf32> -> vector<8x256xf32>
    %192 = arith.addf %189, %191 : vector<8x256xf32>
    %193 = arith.negf %192 : vector<8x256xf32>
    %194 = math.exp %193 : vector<8x256xf32>
    %cst_84 = arith.constant 1.000000e+00 : f32
    %195 = vector.broadcast %cst_84 : f32 to vector<8x256xf32>
    %196 = arith.addf %195, %194 : vector<8x256xf32>
    %197 = arith.divf %195, %196 : vector<8x256xf32>
    %198 = vector.extract_strided_slice %197 {offsets = [0, 0], sizes = [8, 128], strides = [1, 1]} : vector<8x256xf32> to vector<8x128xf32>
    %199 = vector.extract_strided_slice %197 {offsets = [0, 128], sizes = [8, 128], strides = [1, 1]} : vector<8x256xf32> to vector<8x128xf32>
    %200 = vector.extract_strided_slice %188 {offsets = [0, 256], sizes = [8, 128], strides = [1, 1]} : vector<8x384xf32> to vector<8x128xf32>
    %201 = arith.mulf %199, %182 : vector<8x128xf32>
    %c0_85 = arith.constant 0 : index
    %c0_86 = arith.constant 0 : index
    %202 = vector.load %arg4[%c0_85, %c0_86] : memref<128x128xf32, #tpu.memory_space<vmem>>, vector<128x128xf32>
    %cst_87 = arith.constant dense<0.000000e+00> : vector<8x128xf32>
    %203 = tpu.matmul %201, %202, %cst_87 {dimension_numbers = #tpu.dot_dimension_numbers<[1], [0], [0], [1], [0, 0, 1, 1], [], []>} : vector<8x128xf32>, vector<128x128xf32>, vector<8x128xf32> -> vector<8x128xf32>
    %204 = arith.addf %200, %203 : vector<8x128xf32>
    %205 = math.tanh %204 : vector<8x128xf32>
    %206 = arith.subf %205, %182 : vector<8x128xf32>
    %207 = arith.mulf %198, %206 : vector<8x128xf32>
    %208 = arith.addf %182, %207 : vector<8x128xf32>
    %209 = vector.shape_cast %208 : vector<8x128xf32> to vector<8x1x128xf32>
    %c0_88 = arith.constant 0 : index
    %210 = arith.index_cast %c7_i32 : i32 to index
    %c0_89 = arith.constant 0 : index
    %211 = vector.load %arg5[%c0_88, %210, %c0_89] : memref<8x8x128xf32, #tpu.memory_space<vmem>>, vector<8x1x128xf32>
    tpu.vector_store %arg5[%c0_88, %210, %c0_89], %209 {strides = array<i32>} : memref<8x8x128xf32, #tpu.memory_space<vmem>>, vector<8x1x128xf32>,
    %c8_i32 = arith.constant 8 : i32
    %c0_90 = arith.constant 0 : index
    %c0_91 = arith.constant 0 : index
    %212 = vector.load %arg6[%c0_90, %c0_91] : memref<8x128xf32, #tpu.memory_space<vmem>>, vector<8x128xf32>
    tpu.vector_store %arg6[%c0_90, %c0_91], %208 {strides = array<i32>} : memref<8x128xf32, #tpu.memory_space<vmem>>, vector<8x128xf32>,
    return
  }
  func.func @transform_0(%arg0: i32, %arg1: i32) -> (i32, i32, i32) {
    %c0_i32 = arith.constant 0 : i32
    %c0_i32_0 = arith.constant 0 : i32
    return %arg1, %arg0, %c0_i32 : i32, i32, i32
  }
  func.func @transform_1(%arg0: i32, %arg1: i32) -> (i32, i32) {
    %c0_i32 = arith.constant 0 : i32
    %c0_i32_0 = arith.constant 0 : i32
    %c0_i32_1 = arith.constant 0 : i32
    return %c0_i32, %c0_i32_0 : i32, i32
  }
  func.func @transform_2(%arg0: i32, %arg1: i32) -> (i32, i32) {
    %c0_i32 = arith.constant 0 : i32
    %c0_i32_0 = arith.constant 0 : i32
    %c0_i32_1 = arith.constant 0 : i32
    return %c0_i32, %c0_i32_0 : i32, i32
  }
  func.func @transform_3(%arg0: i32, %arg1: i32) -> (i32, i32, i32) {
    %c0_i32 = arith.constant 0 : i32
    %c0_i32_0 = arith.constant 0 : i32
    return %arg0, %arg1, %c0_i32 : i32, i32, i32
  }
}

</mosaic_0001>

<bundles_post_ra>
// kernel: encoder_forward.1
= control target key start
LH: loop header
LB: loop body
LE: loop exit
PB: predicated region body
PF: predicated region fallthrough
CT: control target
= control target key end

     0   :  { %v4236_v3 = vmov 0.0   ;;  %vm2825_vm0 = vmmov 0   ;;  %s4232_s1 = inlined_call_operand.vmem [shape: f32[128,256], index: 1, kind: input, shape index: {}]   ;;  %s4233_s2 = inlined_call_operand.vmem [shape: f32[128,128], index: 2, kind: input, shape index: {}]   ;;  %s4234_s0 = inlined_call_operand.vmem [shape: f32[8,8,384], index: 0, kind: input, shape index: {}]   ;;  %s4235_s3 = inlined_call_operand.vmem [shape: f32[8,8,128], index: 3, kind: output, shape index: {}]  }
   0x1   :  { %v2850_v0 = vld [vmem:[%s4232_s1 + $0xf8] sm:$0xff]  ;;  %v2855_v1 = vld [vmem:[%s4232_s1 + $0xf0] sm:$0xff]  ;;  %v2860_v2 = vld [vmem:[%s4232_s1 + $0xe8] sm:$0xff]  ;;  %119 = vmatprep.mubr.f32.mxu0 %v4236_v3  ;;  %2461 = vmatprep.subr.mxu1 %v4236_v3 }
   0x2   :  { %55 = vmatprep.subr.mxu0 %v2850_v0  ;;  %v2868_v4 = vld [vmem:[%s4232_s1 + $0xe0] sm:$0xff]  ;;  %v2874_v5 = vld [vmem:[%s4232_s1 + $0xd8] sm:$0xff]  ;;  %v2880_v6 = vld [vmem:[%s4232_s1 + $0xd0] sm:$0xff]  ;;  %2493 = vmatprep.mubr.msk.f32.mxu1 %vm2825_vm0, %v4236_v3 }
   0x3   :  { %56 = vmatpush1.msra.mxu0 %v2855_v1  ;;  %v2886_v7 = vld [vmem:[%s4232_s1 + $0xc8] sm:$0xff]  ;;  %v2892_v8 = vld [vmem:[%s4232_s1 + $0xc0] sm:$0xff]  ;;  %v2898_v9 = vld [vmem:[%s4232_s1 + $0xb8] sm:$0xff] }
   0x4   :  { %57 = vmatprep.subr.mxu0 %v2860_v2  ;;  %v2904_v10 = vld [vmem:[%s4232_s1 + $0xb0] sm:$0xff]  ;;  %v2910_v11 = vld [vmem:[%s4232_s1 + $0xa8] sm:$0xff]  ;;  %v2916_v12 = vld [vmem:[%s4232_s1 + $0xa0] sm:$0xff] }
   0x5   :  { %58 = vmatpush1.msra.mxu0 %v2868_v4  ;;  %v2922_v13 = vld [vmem:[%s4232_s1 + $0x98] sm:$0xff]  ;;  %v2928_v14 = vld [vmem:[%s4232_s1 + $0x90] sm:$0xff]  ;;  %v2934_v15 = vld [vmem:[%s4232_s1 + $0x88] sm:$0xff] }
   0x6   :  { %59 = vmatprep.subr.mxu0 %v2874_v5  ;;  %v2940_v16 = vld [vmem:[%s4232_s1 + $0x80] sm:$0xff]  ;;  %v2946_v17 = vld [vmem:[%s4232_s1 + $0x78] sm:$0xff]  ;;  %v2952_v18 = vld [vmem:[%s4232_s1 + $0x70] sm:$0xff] }
   0x7   :  { %60 = vmatpush1.msra.mxu0 %v2880_v6  ;;  %v2958_v19 = vld [vmem:[%s4232_s1 + $0x68] sm:$0xff]  ;;  %v2964_v20 = vld [vmem:[%s4232_s1 + $0x60] sm:$0xff]  ;;  %v2970_v21 = vld [vmem:[%s4232_s1 + $0x58] sm:$0xff] }
   0x8   :  { %61 = vmatprep.subr.mxu0 %v2886_v7  ;;  %v2976_v22 = vld [vmem:[%s4232_s1 + $0x50] sm:$0xff]  ;;  %v2982_v23 = vld [vmem:[%s4232_s1 + $0x48] sm:$0xff]  ;;  %v2988_v24 = vld [vmem:[%s4232_s1 + $0x40] sm:$0xff] }
   0x9   :  { %62 = vmatpush1.msra.mxu0 %v2892_v8  ;;  %v2994_v25 = vld [vmem:[%s4232_s1 + $0x38] sm:$0xff]  ;;  %v3000_v26 = vld [vmem:[%s4232_s1 + $0x30] sm:$0xff]  ;;  %v3006_v27 = vld [vmem:[%s4232_s1 + $0x28] sm:$0xff] }
   0xa   :  { %63 = vmatprep.subr.mxu0 %v2898_v9  ;;  %v3012_v28 = vld [vmem:[%s4232_s1 + $0x20] sm:$0xff]  ;;  %v3018_v29 = vld [vmem:[%s4232_s1 + $0x18] sm:$0xff]  ;;  %v3024_v30 = vld [vmem:[%s4232_s1 + $0x10] sm:$0xff] }
   0xb   :  { %64 = vmatpush1.msra.mxu0 %v2904_v10  ;;  %v3030_v31 = vld [vmem:[%s4232_s1 + $0x8] sm:$0xff]  ;;  %v3036_v32 = vld [vmem:[%s4232_s1] sm:$0xff]  ;;  %v3079_v33 = vld [vmem:[%s4233_s2 + $0x78] sm:$0xff] }
   0xc   :  { %65 = vmatprep.subr.mxu0 %v2910_v11  ;;  %2462 = vmatpush3.msra.mxu1 %v3079_v33  ;;  %v3086_v34 = vld [vmem:[%s4233_s2 + $0x70] sm:$0xff]  ;;  %v3093_v35 = vld [vmem:[%s4233_s2 + $0x68] sm:$0xff]  ;;  %v3100_v36 = vld [vmem:[%s4233_s2 + $0x60] sm:$0xff] }
   0xd   :  { %66 = vmatpush1.msra.mxu0 %v2916_v12  ;;  %2463 = vmatprep.subr.mxu1 %v4236_v3  ;;  %v3107_v37 = vld [vmem:[%s4233_s2 + $0x58] sm:$0xff]  ;;  %v3114_v38 = vld [vmem:[%s4233_s2 + $0x50] sm:$0xff]  ;;  %v3121_v39 = vld [vmem:[%s4233_s2 + $0x48] sm:$0xff] }
   0xe   :  { %67 = vmatprep.subr.mxu0 %v2922_v13  ;;  %2464 = vmatpush3.msra.mxu1 %v3086_v34  ;;  %v3128_v40 = vld [vmem:[%s4233_s2 + $0x40] sm:$0xff]  ;;  %v3135_v41 = vld [vmem:[%s4233_s2 + $0x38] sm:$0xff]  ;;  %v3140_v42 = vld [vmem:[%s4233_s2 + $0x30] sm:$0xff] }
   0xf   :  { %68 = vmatpush1.msra.mxu0 %v2928_v14  ;;  %2465 = vmatprep.subr.mxu1 %v4236_v3  ;;  %v3149_v43 = vld [vmem:[%s4233_s2 + $0x28] sm:$0xff]  ;;  %v3156_v44 = vld [vmem:[%s4233_s2 + $0x20] sm:$0xff]  ;;  %v3163_v45 = vld [vmem:[%s4233_s2 + $0x18] sm:$0xff] }
  0x10   :  { %69 = vmatprep.subr.mxu0 %v2934_v15  ;;  %2466 = vmatpush3.msra.mxu1 %v3093_v35  ;;  %v3170_v46 = vld [vmem:[%s4233_s2 + $0x10] sm:$0xff]  ;;  %v3177_v47 = vld [vmem:[%s4233_s2 + $0x8] sm:$0xff]  ;;  %v3184_v48 = vld [vmem:[%s4233_s2] sm:$0xff] }
  0x11   :  { %70 = vmatpush1.msra.mxu0 %v2940_v16  ;;  %2467 = vmatprep.subr.mxu1 %v4236_v3  ;;  %v21_v50 = vld [vmem:[%s4234_s0 + $0x8] sm:$0xff]  ;;  %v20_v58 = vld [vmem:[%s4234_s0] sm:$0xff]  ;;  %v22_v63 = vld [vmem:[%s4234_s0 + $0x10] sm:$0xff] }
  0x12   :  { %71 = vmatprep.subr.mxu0 %v2946_v17  ;;  %2468 = vmatpush3.msra.mxu1 %v3100_v36 }
  0x13   :  { %72 = vmatpush1.msra.mxu0 %v2952_v18  ;;  %2469 = vmatprep.subr.mxu1 %v4236_v3 }
  0x14   :  { %73 = vmatprep.subr.mxu0 %v2958_v19  ;;  %2470 = vmatpush3.msra.mxu1 %v3107_v37 }
  0x15   :  { %74 = vmatpush1.msra.mxu0 %v2964_v20  ;;  %2471 = vmatprep.subr.mxu1 %v4236_v3 }
  0x16   :  { %75 = vmatprep.subr.mxu0 %v2970_v21  ;;  %2472 = vmatpush3.msra.mxu1 %v3114_v38 }
  0x17   :  { %76 = vmatpush1.msra.mxu0 %v2976_v22  ;;  %2473 = vmatprep.subr.mxu1 %v4236_v3 }
  0x18   :  { %77 = vmatprep.subr.mxu0 %v2982_v23  ;;  %2474 = vmatpush3.msra.mxu1 %v3121_v39 }
  0x19   :  { %78 = vmatpush1.msra.mxu0 %v2988_v24  ;;  %2475 = vmatprep.subr.mxu1 %v4236_v3 }
  0x1a   :  { %79 = vmatprep.subr.mxu0 %v2994_v25  ;;  %2476 = vmatpush3.msra.mxu1 %v3128_v40 }
  0x1b   :  { %80 = vmatpush1.msra.mxu0 %v3000_v26  ;;  %2477 = vmatprep.subr.mxu1 %v4236_v3 }
  0x1c   :  { %81 = vmatprep.subr.mxu0 %v3006_v27  ;;  %2478 = vmatpush3.msra.mxu1 %v3135_v41 }
  0x1d   :  { %82 = vmatpush1.msra.mxu0 %v3012_v28  ;;  %2479 = vmatprep.subr.mxu1 %v4236_v3 }
  0x1e   :  { %83 = vmatprep.subr.mxu0 %v3018_v29  ;;  %2480 = vmatpush3.msra.mxu1 %v3140_v42 }
  0x1f   :  { %84 = vmatpush1.msra.mxu0 %v3024_v30  ;;  %2481 = vmatprep.subr.mxu1 %v4236_v3 }
  0x20   :  { %85 = vmatprep.subr.mxu0 %v3030_v31  ;;  %2482 = vmatpush3.msra.mxu1 %v3149_v43 }
  0x21   :  { %86 = vmatpush1.msra.mxu0 %v3036_v32  ;;  %2483 = vmatprep.subr.mxu1 %v4236_v3 }
  0x22   :  { %120 = vmatmul.mubr.f32.vlgmr.msra.gmra.mxu0 %v4236_v3  ;;  %334 = vmatprep.subr.mxu0 %v2850_v0 }
  0x23   :  { %335 = vmatpush1.msra.mxu0 %v2855_v1  ;;  %398 = vmatprep.mubr.f32.mxu0 %v4236_v3 }
  0x24   :  { %336 = vmatprep.subr.mxu0 %v2860_v2  ;;  %2484 = vmatpush3.msra.mxu1 %v3156_v44 }
  0x25   :  { %337 = vmatpush1.msra.mxu0 %v2868_v4  ;;  %2485 = vmatprep.subr.mxu1 %v4236_v3 }
  0x26   :  { %338 = vmatprep.subr.mxu0 %v2874_v5  ;;  %2486 = vmatpush3.msra.mxu1 %v3163_v45 }
  0x27   :  { %339 = vmatpush1.msra.mxu0 %v2880_v6  ;;  %2487 = vmatprep.subr.mxu1 %v4236_v3 }
  0x28   :  { %340 = vmatprep.subr.mxu0 %v2886_v7  ;;  %2488 = vmatpush3.msra.mxu1 %v3170_v46 }
  0x29   :  { %341 = vmatpush1.msra.mxu0 %v2892_v8  ;;  %2489 = vmatprep.subr.mxu1 %v4236_v3 }
  0x2a   :  { %342 = vmatprep.subr.mxu0 %v2898_v9  ;;  %2490 = vmatpush3.msra.mxu1 %v3177_v47 }
  0x2b   :  { %343 = vmatpush1.msra.mxu0 %v2904_v10  ;;  %2491 = vmatprep.subr.mxu1 %v4236_v3 }
  0x2c   :  { %344 = vmatprep.subr.mxu0 %v2910_v11  ;;  %2492 = vmatpush3.msra.mxu1 %v3184_v48 }
  0x2d   :  { %345 = vmatpush1.msra.mxu0 %v2916_v12  ;;  %2496 = vmatprep.subr.mxu1 %v4236_v3 }
  0x2e   :  { %346 = vmatprep.subr.mxu0 %v2922_v13 }
  0x2f   :  { %347 = vmatpush1.msra.mxu0 %v2928_v14 }
  0x30   :  { %348 = vmatprep.subr.mxu0 %v2934_v15 }
  0x31   :  { %349 = vmatpush1.msra.mxu0 %v2940_v16 }
  0x32   :  { %350 = vmatprep.subr.mxu0 %v2946_v17 }
  0x33   :  { %351 = vmatpush1.msra.mxu0 %v2952_v18 }
  0x34   :  { %352 = vmatprep.subr.mxu0 %v2958_v19 }
  0x35   :  { %353 = vmatpush1.msra.mxu0 %v2964_v20 }
  0x36   :  { %354 = vmatprep.subr.mxu0 %v2970_v21 }
  0x37   :  { %355 = vmatpush1.msra.mxu0 %v2976_v22 }
  0x38   :  { %356 = vmatprep.subr.mxu0 %v2982_v23 }
  0x39   :  { %357 = vmatpush1.msra.mxu0 %v2988_v24 }
  0x3a   :  { %358 = vmatprep.subr.mxu0 %v2994_v25 }
  0x3b   :  { %359 = vmatpush1.msra.mxu0 %v3000_v26 }
  0x3c   :  { %360 = vmatprep.subr.mxu0 %v3006_v27 }
  0x3d   :  { %361 = vmatpush1.msra.mxu0 %v3012_v28 }
  0x3e   :  { %362 = vmatprep.subr.mxu0 %v3018_v29 }
  0x3f   :  { %363 = vmatpush1.msra.mxu0 %v3024_v30 }
  0x40   :  { %364 = vmatprep.subr.mxu0 %v3030_v31 }
  0x41   :  { %365 = vmatpush1.msra.mxu0 %v3036_v32 }
  0x42   :  { %613 = vmatprep.subr.mxu0 %v2850_v0 }
  0xe2   :  { %v121_v49 = vpop.f32.mrf.mxu0 }
  0xe3   :  { %v126_v59 = vadd.f32 %v121_v49, %v20_v58 }
  0xe4   :  { %v123_v51 = vpop.f32.mrf.mxu0 }
  0xe5   :  { %v127_v52 = vadd.f32 %v123_v51, %v21_v50  ;;  %v2256_v60 = vmul.f32 -1.442695, %v126_v59 }
  0xe7   :  { %v2257_v53 = vmul.f32 -1.442695, %v127_v52 }
  0xe9   :  { %2744 = vpow2.f32 %v2257_v53  ;;  %v2826_v53 = vmov 1966171168  }
  0xf6   :  { %v2745_v54 = vpop.eup %2744 }
  0xf7   :  { %v135_v55 = vadd.f32 1.0, %v2745_v54  ;;  %v235_v54 = vunpack.c.l.s4 %v2826_v53 }
  0xf9   :  { %2746 = vrcp.f32 %v135_v55  ;;  %v237_v55 = vlaneseq }
  0xfa   :  { %2748 = vpow2.f32 %v2256_v60 }
 0x106   :  { %v2747_v56 = vpop.eup %2746 }
 0x107   :  { %v140_v57 = vmul.f32 0.0, %v2747_v56  ;;  %v2749_v61 = vpop.eup %2748  ;;  %v236_v56 = vunpack.c.0.s8 %v235_v54 }
 0x108   :  { %v134_v62 = vadd.f32 1.0, %v2749_v61 }
 0x109   :  { %2494 = vmatmul.mubr.f32.vlgmr.msra.gmra.mxu1 %v140_v57  ;;  %v238_v57 = vshrl.u32 %v237_v55, 7 }
 0x10a   :  { %2497 = vmatpush3.msra.mxu1 %v3079_v33  ;;  %2528 = vmatprep.mubr.msk.f32.mxu1 %vm2825_vm0, %v4236_v3  ;;  %2750 = vrcp.f32 %v134_v62  ;;  %v4240_v62 = vmov 0.0  }
 0x10b   :  { %2498 = vmatprep.subr.mxu1 %v4236_v3  ;;  %v3233_v49 = vsub.s32 %v236_v56, %v238_v57 }
 0x10c   :  { %2499 = vmatpush3.msra.mxu1 %v3086_v34 }
 0x10d   :  { %2500 = vmatprep.subr.mxu1 %v4236_v3 }
 0x10e   :  { %2501 = vmatpush3.msra.mxu1 %v3093_v35 }
 0x10f   :  { %2502 = vmatprep.subr.mxu1 %v4236_v3 }
 0x110   :  { %2503 = vmatpush3.msra.mxu1 %v3100_v36 }
 0x111   :  { %2504 = vmatprep.subr.mxu1 %v4236_v3 }
 0x112   :  { %2505 = vmatpush3.msra.mxu1 %v3107_v37 }
 0x113   :  { %2506 = vmatprep.subr.mxu1 %v4236_v3 }
 0x114   :  { %2507 = vmatpush3.msra.mxu1 %v3114_v38 }
 0x115   :  { %2508 = vmatprep.subr.mxu1 %v4236_v3 }
 0x116   :  { %2509 = vmatpush3.msra.mxu1 %v3121_v39 }
 0x117   :  { %2510 = vmatprep.subr.mxu1 %v4236_v3 }
 0x118   :  { %2511 = vmatpush3.msra.mxu1 %v3128_v40 }
 0x119   :  { %2512 = vmatprep.subr.mxu1 %v4236_v3 }
 0x11a   :  { %2513 = vmatpush3.msra.mxu1 %v3135_v41 }
 0x11b   :  { %2514 = vmatprep.subr.mxu1 %v4236_v3 }
 0x11c   :  { %2515 = vmatpush3.msra.mxu1 %v3140_v42 }
 0x11d   :  { %2516 = vmatprep.subr.mxu1 %v4236_v3 }
 0x11e   :  { %2517 = vmatpush3.msra.mxu1 %v3149_v43 }
 0x11f   :  { %2518 = vmatprep.subr.mxu1 %v4236_v3 }
 0x120   :  { %2519 = vmatpush3.msra.mxu1 %v3156_v44 }
 0x121   :  { %2520 = vmatprep.subr.mxu1 %v4236_v3 }
 0x122   :  { %2521 = vmatpush3.msra.mxu1 %v3163_v45 }
 0x123   :  { %2522 = vmatprep.subr.mxu1 %v4236_v3 }
 0x124   :  { %2523 = vmatpush3.msra.mxu1 %v3170_v46 }
 0x125   :  { %2524 = vmatprep.subr.mxu1 %v4236_v3 }
 0x126   :  { %2525 = vmatpush3.msra.mxu1 %v3177_v47 }
 0x127   :  { %2526 = vmatprep.subr.mxu1 %v4236_v3 }
 0x128   :  { %2527 = vmatpush3.msra.mxu1 %v3184_v48 }
 0x129   :  { %2531 = vmatprep.subr.mxu1 %v4236_v3  ;;  %v2751_v3 = vpop.eup %2750 }
 0x1c9   :  { %v223_v50 = vpop.f32.mrf.mxu1 }
 0x1ca   :  { %v227_v51 = vadd.f32 %v223_v50, %v22_v63 }
 0x1cb   :  { %v2495_v52 = vpop.f32.mrf.mxu1 }
 0x1cc   :  { %2752 = vtanh.f32 %v227_v51 }
 0x1d9   :  { %v2753_v58 = vpop.eup %2752 }
 0x1da   :  { %v3235_v59 = vmul.f32 %v2753_v58, %v2751_v3 }
 0x1dc   :  { %v233_v60 = vcombine.high %v3235_v59, %v3235_v59  ;;  %v240_v61 = vrot.slane %v3235_v59, %v3233_v49  ;;  %399 = vmatmul.mubr.f32.vlgmr.msra.gmra.mxu0 %v3235_v59 }
 0x1dd   :  { %614 = vmatpush1.msra.mxu0 %v2855_v1  ;;  %677 = vmatprep.mubr.f32.mxu0 %v4240_v62 }
 0x1de   :  { %v247_v63 = vrot.slane %v233_v60, %v3233_v49  ;;  %v248_v50 = vcombine.high %v240_v61, %v240_v61  ;;  %v256_v51 = vrot.slane %v240_v61, %v3233_v49  ;;  %2258 = vst.sshfl [vmem:[%s4235_s3] sm:$0x1 pattern:$0x73625140] %v240_v61  ;;  %615 = vmatprep.subr.mxu0 %v2860_v2  ;;  %v2263_v61 = vld [vmem:[%s4234_s0 + $0x20] sm:$0xff] }
 0x1df   :  { %616 = vmatpush1.msra.mxu0 %v2868_v4 }
 0x1e0   :  { %v249_v3 = vcombine.high %v247_v63, %v247_v63  ;;  %v263_v52 = vrot.slane %v247_v63, %v3233_v49  ;;  %v270_v53 = vrot.slane %v248_v50, %v3233_v49  ;;  %v278_v54 = vcombine.high %v256_v51, %v256_v51  ;;  %2259 = vst.sshfl [vmem:[%s4235_s3 + $0x8] sm:$0x1 pattern:$0x73625140] %v248_v50 }
 0x1e1   :  { %2260 = vst.sshfl [vmem:[%s4235_s3 + $0x20] sm:$0x1 pattern:$0x73625140] %v247_v63  ;;  %617 = vmatprep.subr.mxu0 %v2874_v5 }
 0x1e2   :  { %618 = vmatpush1.msra.mxu0 %v2880_v6  ;;  %v277_v55 = vrot.slane %v249_v3, %v3233_v49  ;;  %v279_v56 = vcombine.high %v263_v52, %v263_v52  ;;  %v280_v57 = vcombine.high %v270_v53, %v270_v53  ;;  %292 = vst [vmem:[%s4235_s3 + $0x10] sm:$0x1] %v278_v54  ;;  %2261 = vst.sshfl [vmem:[%s4235_s3 + $0x28] sm:$0x1 pattern:$0x73625140] %v249_v3 }
 0x1e3   :  { %619 = vmatprep.subr.mxu0 %v2886_v7 }
 0x1e4   :  { %620 = vmatpush1.msra.mxu0 %v2892_v8  ;;  %v281_v58 = vcombine.high %v277_v55, %v277_v55  ;;  %293 = vst [vmem:[%s4235_s3 + $0x18] sm:$0x1] %v280_v57  ;;  %296 = vst [vmem:[%s4235_s3 + $0x30] sm:$0x1] %v279_v56 }
 0x1e5   :  { %621 = vmatprep.subr.mxu0 %v2898_v9 }
 0x1e6   :  { %622 = vmatpush1.msra.mxu0 %v2904_v10  ;;  %297 = vst [vmem:[%s4235_s3 + $0x38] sm:$0x1] %v281_v58  ;;  %v2264_v58 = vld [vmem:[%s4234_s0 + $0x28] sm:$0xff] }
 0x1e7   :  { %623 = vmatprep.subr.mxu0 %v2910_v11 }
 0x1e8   :  { %624 = vmatpush1.msra.mxu0 %v2916_v12 }
 0x1e9   :  { %625 = vmatprep.subr.mxu0 %v2922_v13 }
 0x1ea   :  { %626 = vmatpush1.msra.mxu0 %v2928_v14 }
 0x1eb   :  { %627 = vmatprep.subr.mxu0 %v2934_v15 }
 0x1ec   :  { %628 = vmatpush1.msra.mxu0 %v2940_v16 }
 0x1ed   :  { %629 = vmatprep.subr.mxu0 %v2946_v17 }
 0x1ee   :  { %630 = vmatpush1.msra.mxu0 %v2952_v18 }
 0x1ef   :  { %631 = vmatprep.subr.mxu0 %v2958_v19 }
 0x1f0   :  { %632 = vmatpush1.msra.mxu0 %v2964_v20 }
 0x1f1   :  { %633 = vmatprep.subr.mxu0 %v2970_v21 }
 0x1f2   :  { %634 = vmatpush1.msra.mxu0 %v2976_v22 }
 0x1f3   :  { %635 = vmatprep.subr.mxu0 %v2982_v23 }
 0x1f4   :  { %636 = vmatpush1.msra.mxu0 %v2988_v24 }
 0x1f5   :  { %637 = vmatprep.subr.mxu0 %v2994_v25 }
 0x1f6   :  { %638 = vmatpush1.msra.mxu0 %v3000_v26 }
 0x1f7   :  { %639 = vmatprep.subr.mxu0 %v3006_v27 }
 0x1f8   :  { %640 = vmatpush1.msra.mxu0 %v3012_v28 }
 0x1f9   :  { %641 = vmatprep.subr.mxu0 %v3018_v29 }
 0x1fa   :  { %642 = vmatpush1.msra.mxu0 %v3024_v30 }
 0x1fb   :  { %643 = vmatprep.subr.mxu0 %v3030_v31 }
 0x1fc   :  { %644 = vmatpush1.msra.mxu0 %v3036_v32 }
 0x1fd   :  { %892 = vmatprep.subr.mxu0 %v2850_v0  ;;  %v2262_v0 = vld [vmem:[%s4234_s0 + $0x18] sm:$0xff] }
 0x29c   :  { %v400_v60 = vpop.f32.mrf.mxu0 }
 0x29d   :  { %v405_v55 = vadd.f32 %v2262_v0, %v400_v60 }
 0x29e   :  { %v402_v63 = vpop.f32.mrf.mxu0 }
 0x29f   :  { %v406_v50 = vadd.f32 %v2263_v61, %v402_v63  ;;  %v2265_v56 = vmul.f32 -1.442695, %v405_v55 }
 0x2a1   :  { %v2266_v51 = vmul.f32 -1.442695, %v406_v50 }
 0x2a3   :  { %2754 = vpow2.f32 %v2266_v51 }
 0x2b0   :  { %v2755_v3 = vpop.eup %2754 }
 0x2b1   :  { %v414_v52 = vadd.f32 1.0, %v2755_v3 }
 0x2b3   :  { %2756 = vrcp.f32 %v414_v52 }
 0x2b4   :  { %2758 = vpow2.f32 %v2265_v56 }
 0x2c0   :  { %v2757_v53 = vpop.eup %2756 }
 0x2c1   :  { %v419_v54 = vmul.f32 %v2757_v53, %v3235_v59  ;;  %v2759_v57 = vpop.eup %2758 }
 0x2c2   :  { %v413_v63 = vadd.f32 1.0, %v2759_v57 }
 0x2c3   :  { %2529 = vmatmul.mubr.f32.vlgmr.msra.gmra.mxu1 %v419_v54 }
 0x2c4   :  { %2532 = vmatpush3.msra.mxu1 %v3079_v33  ;;  %2563 = vmatprep.mubr.msk.f32.mxu1 %vm2825_vm0, %v4240_v62 }
 0x2c5   :  { %2533 = vmatprep.subr.mxu1 %v4240_v62 }
 0x2c6   :  { %2534 = vmatpush3.msra.mxu1 %v3086_v34 }
 0x2c7   :  { %2535 = vmatprep.subr.mxu1 %v4240_v62 }
 0x2c8   :  { %2536 = vmatpush3.msra.mxu1 %v3093_v35 }
 0x2c9   :  { %2537 = vmatprep.subr.mxu1 %v4240_v62 }
 0x2ca   :  { %2538 = vmatpush3.msra.mxu1 %v3100_v36 }
 0x2cb   :  { %2539 = vmatprep.subr.mxu1 %v4240_v62 }
 0x2cc   :  { %2540 = vmatpush3.msra.mxu1 %v3107_v37 }
 0x2cd   :  { %2541 = vmatprep.subr.mxu1 %v4240_v62 }
 0x2ce   :  { %2542 = vmatpush3.msra.mxu1 %v3114_v38 }
 0x2cf   :  { %2543 = vmatprep.subr.mxu1 %v4240_v62 }
 0x2d0   :  { %2544 = vmatpush3.msra.mxu1 %v3121_v39 }
 0x2d1   :  { %2545 = vmatprep.subr.mxu1 %v4240_v62 }
 0x2d2   :  { %2546 = vmatpush3.msra.mxu1 %v3128_v40 }
 0x2d3   :  { %2547 = vmatprep.subr.mxu1 %v4240_v62 }
 0x2d4   :  { %2548 = vmatpush3.msra.mxu1 %v3135_v41 }
 0x2d5   :  { %2549 = vmatprep.subr.mxu1 %v4240_v62 }
 0x2d6   :  { %2550 = vmatpush3.msra.mxu1 %v3140_v42 }
 0x2d7   :  { %2551 = vmatprep.subr.mxu1 %v4240_v62 }
 0x2d8   :  { %2552 = vmatpush3.msra.mxu1 %v3149_v43 }
 0x2d9   :  { %2553 = vmatprep.subr.mxu1 %v4240_v62 }
 0x2da   :  { %2554 = vmatpush3.msra.mxu1 %v3156_v44 }
 0x2db   :  { %2555 = vmatprep.subr.mxu1 %v4240_v62 }
 0x2dc   :  { %2556 = vmatpush3.msra.mxu1 %v3163_v45 }
 0x2dd   :  { %2557 = vmatprep.subr.mxu1 %v4240_v62 }
 0x2de   :  { %2558 = vmatpush3.msra.mxu1 %v3170_v46 }
 0x2df   :  { %2559 = vmatprep.subr.mxu1 %v4240_v62 }
 0x2e0   :  { %2560 = vmatpush3.msra.mxu1 %v3177_v47 }
 0x2e1   :  { %2561 = vmatprep.subr.mxu1 %v4240_v62 }
 0x2e2   :  { %2562 = vmatpush3.msra.mxu1 %v3184_v48 }
 0x2e3   :  { %2566 = vmatprep.subr.mxu1 %v4240_v62 }
 0x383   :  { %v502_v61 = vpop.f32.mrf.mxu1 }
 0x384   :  { %v506_v50 = vadd.f32 %v2264_v58, %v502_v61 }
 0x385   :  { %v2530_v51 = vpop.f32.mrf.mxu1 }
 0x386   :  { %2760 = vtanh.f32 %v506_v50 }
 0x387   :  { %2762 = vrcp.f32 %v413_v63 }
 0x393   :  { %v2761_v3 = vpop.eup %2760 }
 0x394   :  { %v508_v52 = vsub.f32 %v2761_v3, %v3235_v59  ;;  %v2763_v53 = vpop.eup %2762  ;;  %v3550_v3 = vld [vmem:[%s4232_s1 + $0xb8] sm:$0xff] }
 0x396   :  { %v509_v54 = vmul.f32 %v2763_v53, %v508_v52  ;;  %v2281_v53 = vld [vmem:[%s4234_s0 + $0x50] sm:$0xff] }
 0x398   :  { %v3350_v60 = vadd.f32 %v509_v54, %v3235_v59 }
 0x39a   :  { %v512_v0 = vcombine.high %v3350_v60, %v3350_v60  ;;  %v519_v55 = vrot.slane %v3350_v60, %v3233_v49  ;;  %678 = vmatmul.mubr.f32.vlgmr.msra.gmra.mxu0 %v3350_v60 }
 0x39b   :  { %893 = vmatpush1.msra.mxu0 %v2855_v1  ;;  %956 = vmatprep.mubr.f32.mxu0 %v4240_v62 }
 0x39c   :  { %v526_v56 = vrot.slane %v512_v0, %v3233_v49  ;;  %v527_v57 = vcombine.high %v519_v55, %v519_v55  ;;  %v535_v58 = vrot.slane %v519_v55, %v3233_v49  ;;  %2267 = vst.sshfl [vmem:[%s4235_s3 + $0x1] sm:$0x1 pattern:$0x73625140] %v519_v55  ;;  %894 = vmatprep.subr.mxu0 %v2860_v2 }
 0x39d   :  { %895 = vmatpush1.msra.mxu0 %v2868_v4 }
 0x39e   :  { %v528_v59 = vcombine.high %v526_v56, %v526_v56  ;;  %v542_v61 = vrot.slane %v526_v56, %v3233_v49  ;;  %v549_v1 = vrot.slane %v527_v57, %v3233_v49  ;;  %v557_v63 = vcombine.high %v535_v58, %v535_v58  ;;  %2268 = vst.sshfl [vmem:[%s4235_s3 + $0x9] sm:$0x1 pattern:$0x73625140] %v527_v57 }
 0x39f   :  { %2269 = vst.sshfl [vmem:[%s4235_s3 + $0x21] sm:$0x1 pattern:$0x73625140] %v526_v56  ;;  %896 = vmatprep.subr.mxu0 %v2874_v5 }
 0x3a0   :  { %897 = vmatpush1.msra.mxu0 %v2880_v6  ;;  %v556_v2 = vrot.slane %v528_v59, %v3233_v49  ;;  %v558_v4 = vcombine.high %v542_v61, %v542_v61  ;;  %v559_v50 = vcombine.high %v549_v1, %v549_v1  ;;  %571 = vst [vmem:[%s4235_s3 + $0x11] sm:$0x1] %v557_v63  ;;  %2270 = vst.sshfl [vmem:[%s4235_s3 + $0x29] sm:$0x1 pattern:$0x73625140] %v528_v59 }
 0x3a1   :  { %898 = vmatprep.subr.mxu0 %v2886_v7  ;;  %v2272_v6 = vld [vmem:[%s4234_s0 + $0x38] sm:$0xff]  ;;  %v3564_v59 = vld [vmem:[%s4232_s1 + $0xb0] sm:$0xff]  ;;  %v3570_v61 = vld [vmem:[%s4232_s1 + $0xa8] sm:$0xff] }
 0x3a2   :  { %899 = vmatpush1.msra.mxu0 %v2892_v8  ;;  %v560_v51 = vcombine.high %v556_v2, %v556_v2  ;;  %572 = vst [vmem:[%s4235_s3 + $0x19] sm:$0x1] %v559_v50  ;;  %575 = vst [vmem:[%s4235_s3 + $0x31] sm:$0x1] %v558_v4  ;;  %v3576_v1 = vld [vmem:[%s4232_s1 + $0xa0] sm:$0xff]  ;;  %v3582_v63 = vld [vmem:[%s4232_s1 + $0x98] sm:$0xff] }
 0x3a3   :  { %900 = vmatprep.subr.mxu0 %v2898_v9  ;;  %v3588_v2 = vld [vmem:[%s4232_s1 + $0x90] sm:$0xff]  ;;  %v3594_v4 = vld [vmem:[%s4232_s1 + $0x88] sm:$0xff]  ;;  %v3600_v50 = vld [vmem:[%s4232_s1 + $0x80] sm:$0xff] }
 0x3a4   :  { %901 = vmatpush1.msra.mxu0 %v2904_v10  ;;  %576 = vst [vmem:[%s4235_s3 + $0x39] sm:$0x1] %v560_v51  ;;  %v3606_v51 = vld [vmem:[%s4232_s1 + $0x78] sm:$0xff] }
 0x3a5   :  { %902 = vmatprep.subr.mxu0 %v2910_v11 }
 0x3a6   :  { %903 = vmatpush1.msra.mxu0 %v2916_v12 }
 0x3a7   :  { %904 = vmatprep.subr.mxu0 %v2922_v13 }
 0x3a8   :  { %905 = vmatpush1.msra.mxu0 %v2928_v14  ;;  %v2271_v14 = vld [vmem:[%s4234_s0 + $0x30] sm:$0xff] }
 0x3a9   :  { %906 = vmatprep.subr.mxu0 %v2934_v15 }
 0x3aa   :  { %907 = vmatpush1.msra.mxu0 %v2940_v16 }
 0x3ab   :  { %908 = vmatprep.subr.mxu0 %v2946_v17 }
 0x3ac   :  { %909 = vmatpush1.msra.mxu0 %v2952_v18  ;;  %v2273_v18 = vld [vmem:[%s4234_s0 + $0x40] sm:$0xff] }
 0x3ad   :  { %910 = vmatprep.subr.mxu0 %v2958_v19 }
 0x3ae   :  { %911 = vmatpush1.msra.mxu0 %v2964_v20 }
 0x3af   :  { %912 = vmatprep.subr.mxu0 %v2970_v21 }
 0x3b0   :  { %913 = vmatpush1.msra.mxu0 %v2976_v22 }
 0x3b1   :  { %914 = vmatprep.subr.mxu0 %v2982_v23 }
 0x3b2   :  { %915 = vmatpush1.msra.mxu0 %v2988_v24 }
 0x3b3   :  { %916 = vmatprep.subr.mxu0 %v2994_v25 }
 0x3b4   :  { %917 = vmatpush1.msra.mxu0 %v3000_v26 }
 0x3b5   :  { %918 = vmatprep.subr.mxu0 %v3006_v27 }
 0x3b6   :  { %919 = vmatpush1.msra.mxu0 %v3012_v28 }
 0x3b7   :  { %920 = vmatprep.subr.mxu0 %v3018_v29 }
 0x3b8   :  { %921 = vmatpush1.msra.mxu0 %v3024_v30 }
 0x3b9   :  { %922 = vmatprep.subr.mxu0 %v3030_v31 }
 0x3ba   :  { %923 = vmatpush1.msra.mxu0 %v3036_v32 }
 0x45a   :  { %v679_v5 = vpop.f32.mrf.mxu0 }
 0x45b   :  { %v684_v15 = vadd.f32 %v2271_v14, %v679_v5  ;;  %v3612_v5 = vld [vmem:[%s4232_s1 + $0x70] sm:$0xff]  ;;  %v3666_v14 = vld [vmem:[%s4232_s1 + $0x28] sm:$0xff] }
 0x45c   :  { %v681_v7 = vpop.f32.mrf.mxu0 }
 0x45d   :  { %v685_v8 = vadd.f32 %v2272_v6, %v681_v7  ;;  %v2274_v16 = vmul.f32 -1.442695, %v684_v15  ;;  %v3618_v6 = vld [vmem:[%s4232_s1 + $0x68] sm:$0xff]  ;;  %v3624_v7 = vld [vmem:[%s4232_s1 + $0x60] sm:$0xff] }
 0x45e   :  { %v3672_v15 = vld [vmem:[%s4232_s1 + $0x20] sm:$0xff] }
 0x45f   :  { %v2275_v9 = vmul.f32 -1.442695, %v685_v8  ;;  %v3630_v8 = vld [vmem:[%s4232_s1 + $0x58] sm:$0xff] }
 0x461   :  { %2764 = vpow2.f32 %v2275_v9  ;;  %v3636_v9 = vld [vmem:[%s4232_s1 + $0x50] sm:$0xff] }
 0x46e   :  { %v2765_v10 = vpop.eup %2764 }
 0x46f   :  { %v693_v11 = vadd.f32 1.0, %v2765_v10  ;;  %v3642_v10 = vld [vmem:[%s4232_s1 + $0x48] sm:$0xff] }
 0x471   :  { %2766 = vrcp.f32 %v693_v11  ;;  %v3648_v11 = vld [vmem:[%s4232_s1 + $0x40] sm:$0xff] }
 0x472   :  { %2768 = vpow2.f32 %v2274_v16  ;;  %v3678_v16 = vld [vmem:[%s4232_s1 + $0x18] sm:$0xff] }
 0x47e   :  { %v2767_v12 = vpop.eup %2766 }
 0x47f   :  { %v698_v13 = vmul.f32 %v2767_v12, %v3350_v60  ;;  %v2769_v17 = vpop.eup %2768  ;;  %v3654_v12 = vld [vmem:[%s4232_s1 + $0x38] sm:$0xff] }
 0x480   :  { %v692_v20 = vadd.f32 1.0, %v2769_v17  ;;  %v3684_v17 = vld [vmem:[%s4232_s1 + $0x10] sm:$0xff] }
 0x481   :  { %2564 = vmatmul.mubr.f32.vlgmr.msra.gmra.mxu1 %v698_v13  ;;  %v3660_v13 = vld [vmem:[%s4232_s1 + $0x30] sm:$0xff] }
 0x482   :  { %2567 = vmatpush3.msra.mxu1 %v3079_v33  ;;  %2598 = vmatprep.mubr.msk.f32.mxu1 %vm2825_vm0, %v4240_v62 }
 0x483   :  { %2568 = vmatprep.subr.mxu1 %v4240_v62 }
 0x484   :  { %2569 = vmatpush3.msra.mxu1 %v3086_v34 }
 0x485   :  { %2570 = vmatprep.subr.mxu1 %v4240_v62 }
 0x486   :  { %2571 = vmatpush3.msra.mxu1 %v3093_v35 }
 0x487   :  { %2572 = vmatprep.subr.mxu1 %v4240_v62 }
 0x488   :  { %2573 = vmatpush3.msra.mxu1 %v3100_v36 }
 0x489   :  { %2574 = vmatprep.subr.mxu1 %v4240_v62 }
 0x48a   :  { %2575 = vmatpush3.msra.mxu1 %v3107_v37 }
 0x48b   :  { %2576 = vmatprep.subr.mxu1 %v4240_v62 }
 0x48c   :  { %2577 = vmatpush3.msra.mxu1 %v3114_v38 }
 0x48d   :  { %2578 = vmatprep.subr.mxu1 %v4240_v62 }
 0x48e   :  { %2579 = vmatpush3.msra.mxu1 %v3121_v39 }
 0x48f   :  { %2580 = vmatprep.subr.mxu1 %v4240_v62 }
 0x490   :  { %2581 = vmatpush3.msra.mxu1 %v3128_v40 }
 0x491   :  { %2582 = vmatprep.subr.mxu1 %v4240_v62 }
 0x492   :  { %2583 = vmatpush3.msra.mxu1 %v3135_v41  ;;  %v3504_v41 = vld [vmem:[%s4232_s1 + $0xf8] sm:$0xff] }
 0x493   :  { %2584 = vmatprep.subr.mxu1 %v4240_v62  ;;  %1171 = vmatprep.subr.mxu0 %v3504_v41 }
 0x494   :  { %2585 = vmatpush3.msra.mxu1 %v3140_v42  ;;  %v3509_v42 = vld [vmem:[%s4232_s1 + $0xf0] sm:$0xff] }
 0x495   :  { %2586 = vmatprep.subr.mxu1 %v4240_v62 }
 0x496   :  { %2587 = vmatpush3.msra.mxu1 %v3149_v43  ;;  %v3514_v43 = vld [vmem:[%s4232_s1 + $0xe8] sm:$0xff] }
 0x497   :  { %2588 = vmatprep.subr.mxu1 %v4240_v62 }
 0x498   :  { %2589 = vmatpush3.msra.mxu1 %v3156_v44  ;;  %v3520_v44 = vld [vmem:[%s4232_s1 + $0xe0] sm:$0xff] }
 0x499   :  { %2590 = vmatprep.subr.mxu1 %v4240_v62 }
 0x49a   :  { %2591 = vmatpush3.msra.mxu1 %v3163_v45  ;;  %v3526_v45 = vld [vmem:[%s4232_s1 + $0xd8] sm:$0xff] }
 0x49b   :  { %2592 = vmatprep.subr.mxu1 %v4240_v62 }
 0x49c   :  { %2593 = vmatpush3.msra.mxu1 %v3170_v46  ;;  %v3532_v46 = vld [vmem:[%s4232_s1 + $0xd0] sm:$0xff] }
 0x49d   :  { %2594 = vmatprep.subr.mxu1 %v4240_v62 }
 0x49e   :  { %2595 = vmatpush3.msra.mxu1 %v3177_v47  ;;  %v3538_v47 = vld [vmem:[%s4232_s1 + $0xc8] sm:$0xff] }
 0x49f   :  { %2596 = vmatprep.subr.mxu1 %v4240_v62 }
 0x4a0   :  { %2597 = vmatpush3.msra.mxu1 %v3184_v48  ;;  %v3544_v48 = vld [vmem:[%s4232_s1 + $0xc0] sm:$0xff] }
 0x4a1   :  { %2601 = vmatprep.subr.mxu1 %v4240_v62 }
 0x541   :  { %v781_v19 = vpop.f32.mrf.mxu1 }
 0x542   :  { %v785_v21 = vadd.f32 %v2273_v18, %v781_v19  ;;  %v3689_v18 = vld [vmem:[%s4232_s1 + $0x8] sm:$0xff]  ;;  %v3694_v19 = vld [vmem:[%s4232_s1] sm:$0xff] }
 0x543   :  { %v2565_v22 = vpop.f32.mrf.mxu1 }
 0x544   :  { %2770 = vtanh.f32 %v785_v21 }
 0x545   :  { %2772 = vrcp.f32 %v692_v20  ;;  %v2280_v20 = vld [vmem:[%s4234_s0 + $0x48] sm:$0xff] }
 0x551   :  { %v2771_v23 = vpop.eup %2770 }
 0x552   :  { %v787_v24 = vsub.f32 %v2771_v23, %v3350_v60  ;;  %v2773_v25 = vpop.eup %2772 }
 0x554   :  { %v788_v26 = vmul.f32 %v2773_v25, %v787_v24  ;;  %v2282_v24 = vld [vmem:[%s4234_s0 + $0x58] sm:$0xff] }
 0x556   :  { %v3464_v27 = vadd.f32 %v788_v26, %v3350_v60 }
 0x558   :  { %v791_v28 = vcombine.high %v3464_v27, %v3464_v27  ;;  %v798_v29 = vrot.slane %v3464_v27, %v3233_v49  ;;  %957 = vmatmul.mubr.f32.vlgmr.msra.gmra.mxu0 %v3464_v27 }
 0x559   :  { %1235 = vmatprep.mubr.f32.mxu0 %v4240_v62  ;;  %1172 = vmatpush1.msra.mxu0 %v3509_v42 }
 0x55a   :  { %v805_v30 = vrot.slane %v791_v28, %v3233_v49  ;;  %v806_v31 = vcombine.high %v798_v29, %v798_v29  ;;  %v814_v32 = vrot.slane %v798_v29, %v3233_v49  ;;  %2276 = vst.sshfl [vmem:[%s4235_s3 + $0x2] sm:$0x1 pattern:$0x73625140] %v798_v29  ;;  %1173 = vmatprep.subr.mxu0 %v3514_v43 }
 0x55b   :  { %1174 = vmatpush1.msra.mxu0 %v3520_v44 }
 0x55c   :  { %v807_v33 = vcombine.high %v805_v30, %v805_v30  ;;  %v821_v34 = vrot.slane %v805_v30, %v3233_v49  ;;  %v828_v35 = vrot.slane %v806_v31, %v3233_v49  ;;  %v836_v36 = vcombine.high %v814_v32, %v814_v32  ;;  %2277 = vst.sshfl [vmem:[%s4235_s3 + $0xa] sm:$0x1 pattern:$0x73625140] %v806_v31 }
 0x55d   :  { %2278 = vst.sshfl [vmem:[%s4235_s3 + $0x22] sm:$0x1 pattern:$0x73625140] %v805_v30  ;;  %1175 = vmatprep.subr.mxu0 %v3526_v45 }
 0x55e   :  { %v835_v37 = vrot.slane %v807_v33, %v3233_v49  ;;  %v837_v38 = vcombine.high %v821_v34, %v821_v34  ;;  %v838_v39 = vcombine.high %v828_v35, %v828_v35  ;;  %850 = vst [vmem:[%s4235_s3 + $0x12] sm:$0x1] %v836_v36  ;;  %2279 = vst.sshfl [vmem:[%s4235_s3 + $0x2a] sm:$0x1 pattern:$0x73625140] %v807_v33  ;;  %1176 = vmatpush1.msra.mxu0 %v3532_v46 }
 0x55f   :  { %1177 = vmatprep.subr.mxu0 %v3538_v47 }
 0x560   :  { %v839_v40 = vcombine.high %v835_v37, %v835_v37  ;;  %851 = vst [vmem:[%s4235_s3 + $0x1a] sm:$0x1] %v838_v39  ;;  %854 = vst [vmem:[%s4235_s3 + $0x32] sm:$0x1] %v837_v38  ;;  %1178 = vmatpush1.msra.mxu0 %v3544_v48 }
 0x561   :  { %1179 = vmatprep.subr.mxu0 %v3550_v3 }
 0x562   :  { %855 = vst [vmem:[%s4235_s3 + $0x3a] sm:$0x1] %v839_v40  ;;  %1180 = vmatpush1.msra.mxu0 %v3564_v59 }
 0x563   :  { %1181 = vmatprep.subr.mxu0 %v3570_v61 }
 0x564   :  { %1182 = vmatpush1.msra.mxu0 %v3576_v1 }
 0x565   :  { %1183 = vmatprep.subr.mxu0 %v3582_v63 }
 0x566   :  { %1184 = vmatpush1.msra.mxu0 %v3588_v2 }
 0x567   :  { %1185 = vmatprep.subr.mxu0 %v3594_v4 }
 0x568   :  { %1186 = vmatpush1.msra.mxu0 %v3600_v50 }
 0x569   :  { %1187 = vmatprep.subr.mxu0 %v3606_v51 }
 0x56a   :  { %1188 = vmatpush1.msra.mxu0 %v3612_v5 }
 0x56b   :  { %1189 = vmatprep.subr.mxu0 %v3618_v6 }
 0x56c   :  { %1190 = vmatpush1.msra.mxu0 %v3624_v7 }
 0x56d   :  { %1191 = vmatprep.subr.mxu0 %v3630_v8 }
 0x56e   :  { %1192 = vmatpush1.msra.mxu0 %v3636_v9 }
 0x56f   :  { %1193 = vmatprep.subr.mxu0 %v3642_v10 }
 0x570   :  { %1194 = vmatpush1.msra.mxu0 %v3648_v11 }
 0x571   :  { %1195 = vmatprep.subr.mxu0 %v3654_v12 }
 0x572   :  { %1196 = vmatpush1.msra.mxu0 %v3660_v13 }
 0x573   :  { %1197 = vmatprep.subr.mxu0 %v3666_v14 }
 0x574   :  { %1198 = vmatpush1.msra.mxu0 %v3672_v15 }
 0x575   :  { %1199 = vmatprep.subr.mxu0 %v3678_v16 }
 0x576   :  { %1200 = vmatpush1.msra.mxu0 %v3684_v17 }
 0x577   :  { %1201 = vmatprep.subr.mxu0 %v3689_v18 }
 0x578   :  { %1202 = vmatpush1.msra.mxu0 %v3694_v19 }
 0x579   :  { %1450 = vmatprep.subr.mxu0 %v3504_v41 }
 0x618   :  { %v958_v52 = vpop.f32.mrf.mxu0 }
 0x619   :  { %v963_v21 = vadd.f32 %v2280_v20, %v958_v52  ;;  %v3801_v20 = vld [vmem:[%s4233_s2 + $0x60] sm:$0xff] }
 0x61a   :  { %v960_v54 = vpop.f32.mrf.mxu0 }
 0x61b   :  { %v964_v60 = vadd.f32 %v2281_v53, %v960_v54  ;;  %v2283_v22 = vmul.f32 -1.442695, %v963_v21  ;;  %v3808_v21 = vld [vmem:[%s4233_s2 + $0x58] sm:$0xff] }
 0x61d   :  { %v2284_v0 = vmul.f32 -1.442695, %v964_v60 }
 0x61f   :  { %2774 = vpow2.f32 %v2284_v0 }
 0x62c   :  { %v2775_v55 = vpop.eup %2774 }
 0x62d   :  { %v972_v56 = vadd.f32 1.0, %v2775_v55 }
 0x62f   :  { %2776 = vrcp.f32 %v972_v56  ;;  %v3780_v56 = vld [vmem:[%s4233_s2 + $0x78] sm:$0xff] }
 0x630   :  { %2778 = vpow2.f32 %v2283_v22  ;;  %v3815_v22 = vld [vmem:[%s4233_s2 + $0x50] sm:$0xff] }
 0x63c   :  { %v2777_v57 = vpop.eup %2776 }
 0x63d   :  { %v977_v58 = vmul.f32 %v2777_v57, %v3464_v27  ;;  %v2779_v23 = vpop.eup %2778  ;;  %v3787_v57 = vld [vmem:[%s4233_s2 + $0x70] sm:$0xff] }
 0x63e   :  { %v971_v26 = vadd.f32 1.0, %v2779_v23  ;;  %v3822_v23 = vld [vmem:[%s4233_s2 + $0x48] sm:$0xff] }
 0x63f   :  { %2599 = vmatmul.mubr.f32.vlgmr.msra.gmra.mxu1 %v977_v58  ;;  %v3794_v58 = vld [vmem:[%s4233_s2 + $0x68] sm:$0xff] }
 0x640   :  { %2633 = vmatprep.mubr.msk.f32.mxu1 %vm2825_vm0, %v4240_v62  ;;  %2602 = vmatpush3.msra.mxu1 %v3780_v56 }
 0x641   :  { %2603 = vmatprep.subr.mxu1 %v4240_v62 }
 0x642   :  { %2604 = vmatpush3.msra.mxu1 %v3787_v57 }
 0x643   :  { %2605 = vmatprep.subr.mxu1 %v4240_v62 }
 0x644   :  { %2606 = vmatpush3.msra.mxu1 %v3794_v58 }
 0x645   :  { %2607 = vmatprep.subr.mxu1 %v4240_v62 }
 0x646   :  { %2608 = vmatpush3.msra.mxu1 %v3801_v20 }
 0x647   :  { %2609 = vmatprep.subr.mxu1 %v4240_v62 }
 0x648   :  { %2610 = vmatpush3.msra.mxu1 %v3808_v21 }
 0x649   :  { %2611 = vmatprep.subr.mxu1 %v4240_v62 }
 0x64a   :  { %2612 = vmatpush3.msra.mxu1 %v3815_v22 }
 0x64b   :  { %2613 = vmatprep.subr.mxu1 %v4240_v62 }
 0x64c   :  { %2614 = vmatpush3.msra.mxu1 %v3822_v23 }
 0x64d   :  { %2615 = vmatprep.subr.mxu1 %v4240_v62 }
 0x6ff   :  { %v1060_v25 = vpop.f32.mrf.mxu1 }
 0x700   :  { %v1064_v28 = vadd.f32 %v2282_v24, %v1060_v25  ;;  %v3829_v24 = vld [vmem:[%s4233_s2 + $0x40] sm:$0xff]  ;;  %v3836_v25 = vld [vmem:[%s4233_s2 + $0x38] sm:$0xff] }
 0x701   :  { %v2600_v29 = vpop.f32.mrf.mxu1  ;;  %2616 = vmatpush3.msra.mxu1 %v3829_v24 }
 0x702   :  { %2780 = vtanh.f32 %v1064_v28  ;;  %2617 = vmatprep.subr.mxu1 %v4240_v62  ;;  %v3848_v28 = vld [vmem:[%s4233_s2 + $0x28] sm:$0xff]  ;;  %v3855_v29 = vld [vmem:[%s4233_s2 + $0x20] sm:$0xff] }
 0x703   :  { %2782 = vrcp.f32 %v971_v26  ;;  %v3841_v26 = vld [vmem:[%s4233_s2 + $0x30] sm:$0xff]  ;;  %2618 = vmatpush3.msra.mxu1 %v3836_v25 }
 0x704   :  { %2619 = vmatprep.subr.mxu1 %v4240_v62 }
 0x705   :  { %2620 = vmatpush3.msra.mxu1 %v3841_v26 }
 0x706   :  { %2621 = vmatprep.subr.mxu1 %v4240_v62 }
 0x707   :  { %2622 = vmatpush3.msra.mxu1 %v3848_v28 }
 0x708   :  { %2623 = vmatprep.subr.mxu1 %v4240_v62 }
 0x709   :  { %2624 = vmatpush3.msra.mxu1 %v3855_v29 }
 0x70a   :  { %2625 = vmatprep.subr.mxu1 %v4240_v62 }
 0x70f   :  { %v2781_v30 = vpop.eup %2780 }
 0x710   :  { %v1066_v31 = vsub.f32 %v2781_v30, %v3464_v27  ;;  %v2783_v32 = vpop.eup %2782  ;;  %v3862_v30 = vld [vmem:[%s4233_s2 + $0x18] sm:$0xff] }
 0x711   :  { %2626 = vmatpush3.msra.mxu1 %v3862_v30 }
 0x712   :  { %v1067_v33 = vmul.f32 %v2783_v32, %v1066_v31  ;;  %v3869_v31 = vld [vmem:[%s4233_s2 + $0x10] sm:$0xff]  ;;  %2627 = vmatprep.subr.mxu1 %v4240_v62  ;;  %v3876_v32 = vld [vmem:[%s4233_s2 + $0x8] sm:$0xff] }
 0x713   :  { %2628 = vmatpush3.msra.mxu1 %v3869_v31 }
 0x714   :  { %v3708_v34 = vadd.f32 %v1067_v33, %v3464_v27  ;;  %2629 = vmatprep.subr.mxu1 %v4240_v62  ;;  %v3883_v33 = vld [vmem:[%s4233_s2] sm:$0xff] }
 0x715   :  { %4241 = vst [vmem:[#allocation3_spill] sm:$0xff] %v3883_v33  ;;  %2630 = vmatpush3.msra.mxu1 %v3876_v32 }
 0x716   :  { %v1070_v35 = vcombine.high %v3708_v34, %v3708_v34  ;;  %v1077_v36 = vrot.slane %v3708_v34, %v3233_v49  ;;  %1236 = vmatmul.mubr.f32.vlgmr.msra.gmra.mxu0 %v3708_v34  ;;  %2631 = vmatprep.subr.mxu1 %v4240_v62 }
 0x717   :  { %1451 = vmatpush1.msra.mxu0 %v3509_v42  ;;  %1514 = vmatprep.mubr.f32.mxu0 %v4240_v62 }
 0x718   :  { %v1084_v37 = vrot.slane %v1070_v35, %v3233_v49  ;;  %v1085_v38 = vcombine.high %v1077_v36, %v1077_v36  ;;  %v1093_v39 = vrot.slane %v1077_v36, %v3233_v49  ;;  %2285 = vst.sshfl [vmem:[%s4235_s3 + $0x3] sm:$0x1 pattern:$0x73625140] %v1077_v36  ;;  %1452 = vmatprep.subr.mxu0 %v3514_v43  ;;  %v2290_v36 = vld [vmem:[%s4234_s0 + $0x68] sm:$0xff] }
 0x719   :  { %1453 = vmatpush1.msra.mxu0 %v3520_v44  ;;  %2632 = vmatpush3.msra.mxu1 %v3883_v33 }
 0x71a   :  { %v1086_v27 = vcombine.high %v1084_v37, %v1084_v37  ;;  %v1100_v40 = vrot.slane %v1084_v37, %v3233_v49  ;;  %v1107_v52 = vrot.slane %v1085_v38, %v3233_v49  ;;  %v1115_v53 = vcombine.high %v1093_v39, %v1093_v39  ;;  %2286 = vst.sshfl [vmem:[%s4235_s3 + $0xb] sm:$0x1 pattern:$0x73625140] %v1085_v38 }
 0x71b   :  { %2287 = vst.sshfl [vmem:[%s4235_s3 + $0x23] sm:$0x1 pattern:$0x73625140] %v1084_v37  ;;  %1454 = vmatprep.subr.mxu0 %v3526_v45  ;;  %2636 = vmatprep.subr.mxu1 %v4240_v62 }
 0x71c   :  { %1455 = vmatpush1.msra.mxu0 %v3532_v46  ;;  %v1114_v54 = vrot.slane %v1086_v27, %v3233_v49  ;;  %v1116_v60 = vcombine.high %v1100_v40, %v1100_v40  ;;  %v1117_v0 = vcombine.high %v1107_v52, %v1107_v52  ;;  %1129 = vst [vmem:[%s4235_s3 + $0x13] sm:$0x1] %v1115_v53  ;;  %2288 = vst.sshfl [vmem:[%s4235_s3 + $0x2b] sm:$0x1 pattern:$0x73625140] %v1086_v27 }
 0x71d   :  { %1456 = vmatprep.subr.mxu0 %v3538_v47 }
 0x71e   :  { %1457 = vmatpush1.msra.mxu0 %v3544_v48  ;;  %v1118_v55 = vcombine.high %v1114_v54, %v1114_v54  ;;  %1130 = vst [vmem:[%s4235_s3 + $0x1b] sm:$0x1] %v1117_v0  ;;  %1133 = vst [vmem:[%s4235_s3 + $0x33] sm:$0x1] %v1116_v60  ;;  %v2289_v54 = vld [vmem:[%s4234_s0 + $0x60] sm:$0xff] }
 0x71f   :  { %1458 = vmatprep.subr.mxu0 %v3550_v3 }
 0x720   :  { %1459 = vmatpush1.msra.mxu0 %v3564_v59  ;;  %1134 = vst [vmem:[%s4235_s3 + $0x3b] sm:$0x1] %v1118_v55 }
 0x721   :  { %1460 = vmatprep.subr.mxu0 %v3570_v61 }
 0x722   :  { %1461 = vmatpush1.msra.mxu0 %v3576_v1 }
 0x723   :  { %1462 = vmatprep.subr.mxu0 %v3582_v63 }
 0x724   :  { %1463 = vmatpush1.msra.mxu0 %v3588_v2 }
 0x725   :  { %1464 = vmatprep.subr.mxu0 %v3594_v4 }
 0x726   :  { %1465 = vmatpush1.msra.mxu0 %v3600_v50 }
 0x727   :  { %1466 = vmatprep.subr.mxu0 %v3606_v51 }
 0x728   :  { %1467 = vmatpush1.msra.mxu0 %v3612_v5 }
 0x729   :  { %1468 = vmatprep.subr.mxu0 %v3618_v6 }
 0x72a   :  { %1469 = vmatpush1.msra.mxu0 %v3624_v7 }
 0x72b   :  { %1470 = vmatprep.subr.mxu0 %v3630_v8 }
 0x72c   :  { %1471 = vmatpush1.msra.mxu0 %v3636_v9 }
 0x72d   :  { %1472 = vmatprep.subr.mxu0 %v3642_v10 }
 0x72e   :  { %1473 = vmatpush1.msra.mxu0 %v3648_v11 }
 0x72f   :  { %1474 = vmatprep.subr.mxu0 %v3654_v12 }
 0x730   :  { %1475 = vmatpush1.msra.mxu0 %v3660_v13 }
 0x731   :  { %1476 = vmatprep.subr.mxu0 %v3666_v14 }
 0x732   :  { %1477 = vmatpush1.msra.mxu0 %v3672_v15 }
 0x733   :  { %1478 = vmatprep.subr.mxu0 %v3678_v16 }
 0x734   :  { %1479 = vmatpush1.msra.mxu0 %v3684_v17 }
 0x735   :  { %1480 = vmatprep.subr.mxu0 %v3689_v18 }
 0x736   :  { %1481 = vmatpush1.msra.mxu0 %v3694_v19 }
 0x737   :  { %1729 = vmatprep.subr.mxu0 %v3504_v41 }
 0x7d6   :  { %v1237_v35 = vpop.f32.mrf.mxu0 }
 0x7d7   :  { %v1242_v60 = vadd.f32 %v2289_v54, %v1237_v35 }
 0x7d8   :  { %v1239_v37 = vpop.f32.mrf.mxu0 }
 0x7d9   :  { %v1243_v38 = vadd.f32 %v2290_v36, %v1239_v37  ;;  %v2292_v0 = vmul.f32 -1.442695, %v1242_v60  ;;  %v2291_v36 = vld [vmem:[%s4234_s0 + $0x70] sm:$0xff] }
 0x7db   :  { %v2293_v39 = vmul.f32 -1.442695, %v1243_v38 }
 0x7dd   :  { %2784 = vpow2.f32 %v2293_v39 }
 0x7ea   :  { %v2785_v27 = vpop.eup %2784 }
 0x7eb   :  { %v1251_v40 = vadd.f32 1.0, %v2785_v27 }
 0x7ed   :  { %2786 = vrcp.f32 %v1251_v40 }
 0x7ee   :  { %2788 = vpow2.f32 %v2292_v0 }
 0x7fa   :  { %v2787_v52 = vpop.eup %2786 }
 0x7fb   :  { %v1256_v53 = vmul.f32 %v2787_v52, %v3708_v34  ;;  %v2789_v55 = vpop.eup %2788 }
 0x7fc   :  { %v1250_v38 = vadd.f32 1.0, %v2789_v55 }
 0x7fd   :  { %2634 = vmatmul.mubr.f32.vlgmr.msra.gmra.mxu1 %v1256_v53 }
 0x7fe   :  { %2637 = vmatpush3.msra.mxu1 %v3780_v56  ;;  %2668 = vmatprep.mubr.msk.f32.mxu1 %vm2825_vm0, %v4240_v62 }
 0x7ff   :  { %2638 = vmatprep.subr.mxu1 %v4240_v62 }
 0x800   :  { %2639 = vmatpush3.msra.mxu1 %v3787_v57 }
 0x801   :  { %2640 = vmatprep.subr.mxu1 %v4240_v62 }
 0x802   :  { %2641 = vmatpush3.msra.mxu1 %v3794_v58 }
 0x803   :  { %2642 = vmatprep.subr.mxu1 %v4240_v62 }
 0x804   :  { %2643 = vmatpush3.msra.mxu1 %v3801_v20 }
 0x805   :  { %2644 = vmatprep.subr.mxu1 %v4240_v62 }
 0x806   :  { %2645 = vmatpush3.msra.mxu1 %v3808_v21 }
 0x807   :  { %2646 = vmatprep.subr.mxu1 %v4240_v62 }
 0x808   :  { %2647 = vmatpush3.msra.mxu1 %v3815_v22 }
 0x809   :  { %2648 = vmatprep.subr.mxu1 %v4240_v62 }
 0x80a   :  { %2649 = vmatpush3.msra.mxu1 %v3822_v23 }
 0x80b   :  { %2650 = vmatprep.subr.mxu1 %v4240_v62 }
 0x80c   :  { %2651 = vmatpush3.msra.mxu1 %v3829_v24 }
 0x80d   :  { %2652 = vmatprep.subr.mxu1 %v4240_v62 }
 0x80e   :  { %2653 = vmatpush3.msra.mxu1 %v3836_v25 }
 0x80f   :  { %2654 = vmatprep.subr.mxu1 %v4240_v62 }
 0x810   :  { %2655 = vmatpush3.msra.mxu1 %v3841_v26 }
 0x811   :  { %2656 = vmatprep.subr.mxu1 %v4240_v62 }
 0x812   :  { %2657 = vmatpush3.msra.mxu1 %v3848_v28 }
 0x813   :  { %2658 = vmatprep.subr.mxu1 %v4240_v62 }
 0x814   :  { %2659 = vmatpush3.msra.mxu1 %v3855_v29 }
 0x815   :  { %2660 = vmatprep.subr.mxu1 %v4240_v62 }
 0x816   :  { %2661 = vmatpush3.msra.mxu1 %v3862_v30 }
 0x817   :  { %2662 = vmatprep.subr.mxu1 %v4240_v62 }
 0x818   :  { %2663 = vmatpush3.msra.mxu1 %v3869_v31 }
 0x819   :  { %2664 = vmatprep.subr.mxu1 %v4240_v62 }
 0x81a   :  { %2665 = vmatpush3.msra.mxu1 %v3876_v32 }
 0x81b   :  { %2666 = vmatprep.subr.mxu1 %v4240_v62 }
 0x81c   :  { %2667 = vmatpush3.msra.mxu1 %v3883_v33 }
 0x81d   :  { %2671 = vmatprep.subr.mxu1 %v4240_v62 }
 0x8bd   :  { %v1339_v37 = vpop.f32.mrf.mxu1 }
 0x8be   :  { %v1343_v39 = vadd.f32 %v2291_v36, %v1339_v37 }
 0x8bf   :  { %v2635_v27 = vpop.f32.mrf.mxu1 }
 0x8c0   :  { %2790 = vtanh.f32 %v1343_v39 }
 0x8c1   :  { %2792 = vrcp.f32 %v1250_v38 }
 0x8cd   :  { %v2791_v40 = vpop.eup %2790 }
 0x8ce   :  { %v1345_v52 = vsub.f32 %v2791_v40, %v3708_v34  ;;  %v2793_v53 = vpop.eup %2792 }
 0x8d0   :  { %v1346_v33 = vmul.f32 %v2793_v53, %v1345_v52 }
 0x8d2   :  { %v3935_v35 = vadd.f32 %v1346_v33, %v3708_v34 }
 0x8d4   :  { %v1349_v54 = vcombine.high %v3935_v35, %v3935_v35  ;;  %v1356_v60 = vrot.slane %v3935_v35, %v3233_v49  ;;  %1515 = vmatmul.mubr.f32.vlgmr.msra.gmra.mxu0 %v3935_v35 }
 0x8d5   :  { %1730 = vmatpush1.msra.mxu0 %v3509_v42  ;;  %1793 = vmatprep.mubr.f32.mxu0 %v4240_v62 }
 0x8d6   :  { %v1363_v0 = vrot.slane %v1349_v54, %v3233_v49  ;;  %v1364_v55 = vcombine.high %v1356_v60, %v1356_v60  ;;  %v1372_v36 = vrot.slane %v1356_v60, %v3233_v49  ;;  %2294 = vst.sshfl [vmem:[%s4235_s3 + $0x4] sm:$0x1 pattern:$0x73625140] %v1356_v60  ;;  %1731 = vmatprep.subr.mxu0 %v3514_v43  ;;  %v2299_v54 = vld [vmem:[%s4234_s0 + $0x80] sm:$0xff] }
 0x8d7   :  { %1732 = vmatpush1.msra.mxu0 %v3520_v44 }
 0x8d8   :  { %v1365_v34 = vcombine.high %v1363_v0, %v1363_v0  ;;  %v1379_v33 = vrot.slane %v1363_v0, %v3233_v49  ;;  %v1386_v37 = vrot.slane %v1364_v55, %v3233_v49  ;;  %v1394_v38 = vcombine.high %v1372_v36, %v1372_v36  ;;  %2295 = vst.sshfl [vmem:[%s4235_s3 + $0xc] sm:$0x1 pattern:$0x73625140] %v1364_v55 }
 0x8d9   :  { %2296 = vst.sshfl [vmem:[%s4235_s3 + $0x24] sm:$0x1 pattern:$0x73625140] %v1363_v0  ;;  %1733 = vmatprep.subr.mxu0 %v3526_v45 }
 0x8da   :  { %1734 = vmatpush1.msra.mxu0 %v3532_v46  ;;  %v1393_v39 = vrot.slane %v1365_v34, %v3233_v49  ;;  %v1395_v27 = vcombine.high %v1379_v33, %v1379_v33  ;;  %v1396_v40 = vcombine.high %v1386_v37, %v1386_v37  ;;  %1408 = vst [vmem:[%s4235_s3 + $0x14] sm:$0x1] %v1394_v38  ;;  %2297 = vst.sshfl [vmem:[%s4235_s3 + $0x2c] sm:$0x1 pattern:$0x73625140] %v1365_v34 }
 0x8db   :  { %1735 = vmatprep.subr.mxu0 %v3538_v47  ;;  %v2298_v38 = vld [vmem:[%s4234_s0 + $0x78] sm:$0xff] }
 0x8dc   :  { %1736 = vmatpush1.msra.mxu0 %v3544_v48  ;;  %v1397_v52 = vcombine.high %v1393_v39, %v1393_v39  ;;  %1409 = vst [vmem:[%s4235_s3 + $0x1c] sm:$0x1] %v1396_v40  ;;  %1412 = vst [vmem:[%s4235_s3 + $0x34] sm:$0x1] %v1395_v27 }
 0x8dd   :  { %1737 = vmatprep.subr.mxu0 %v3550_v3 }
 0x8de   :  { %1738 = vmatpush1.msra.mxu0 %v3564_v59  ;;  %1413 = vst [vmem:[%s4235_s3 + $0x3c] sm:$0x1] %v1397_v52  ;;  %v2300_v52 = vld [vmem:[%s4234_s0 + $0x88] sm:$0xff] }
 0x8df   :  { %1739 = vmatprep.subr.mxu0 %v3570_v61 }
 0x8e0   :  { %1740 = vmatpush1.msra.mxu0 %v3576_v1 }
 0x8e1   :  { %1741 = vmatprep.subr.mxu0 %v3582_v63 }
 0x8e2   :  { %1742 = vmatpush1.msra.mxu0 %v3588_v2 }
 0x8e3   :  { %1743 = vmatprep.subr.mxu0 %v3594_v4 }
 0x8e4   :  { %1744 = vmatpush1.msra.mxu0 %v3600_v50 }
 0x8e5   :  { %1745 = vmatprep.subr.mxu0 %v3606_v51 }
 0x8e6   :  { %1746 = vmatpush1.msra.mxu0 %v3612_v5 }
 0x8e7   :  { %1747 = vmatprep.subr.mxu0 %v3618_v6 }
 0x8e8   :  { %1748 = vmatpush1.msra.mxu0 %v3624_v7 }
 0x8e9   :  { %1749 = vmatprep.subr.mxu0 %v3630_v8 }
 0x8ea   :  { %1750 = vmatpush1.msra.mxu0 %v3636_v9 }
 0x8eb   :  { %1751 = vmatprep.subr.mxu0 %v3642_v10 }
 0x8ec   :  { %1752 = vmatpush1.msra.mxu0 %v3648_v11 }
 0x8ed   :  { %1753 = vmatprep.subr.mxu0 %v3654_v12 }
 0x8ee   :  { %1754 = vmatpush1.msra.mxu0 %v3660_v13 }
 0x8ef   :  { %1755 = vmatprep.subr.mxu0 %v3666_v14 }
 0x8f0   :  { %1756 = vmatpush1.msra.mxu0 %v3672_v15 }
 0x8f1   :  { %1757 = vmatprep.subr.mxu0 %v3678_v16 }
 0x8f2   :  { %1758 = vmatpush1.msra.mxu0 %v3684_v17 }
 0x8f3   :  { %1759 = vmatprep.subr.mxu0 %v3689_v18 }
 0x8f4   :  { %1760 = vmatpush1.msra.mxu0 %v3694_v19 }
 0x8f5   :  { %2008 = vmatprep.subr.mxu0 %v3504_v41  ;;  %v4242_v41 = vld [vmem:[#allocation3_spill] sm:$0xff] }
 0x994   :  { %v1516_v53 = vpop.f32.mrf.mxu0 }
 0x995   :  { %v1521_v39 = vadd.f32 %v2298_v38, %v1516_v53 }
 0x996   :  { %v1518_v60 = vpop.f32.mrf.mxu0 }
 0x997   :  { %v1522_v0 = vadd.f32 %v2299_v54, %v1518_v60  ;;  %v2301_v27 = vmul.f32 -1.442695, %v1521_v39 }
 0x999   :  { %v2302_v55 = vmul.f32 -1.442695, %v1522_v0 }
 0x99b   :  { %2794 = vpow2.f32 %v2302_v55 }
 0x9a8   :  { %v2795_v36 = vpop.eup %2794 }
 0x9a9   :  { %v1530_v34 = vadd.f32 1.0, %v2795_v36 }
 0x9ab   :  { %2796 = vrcp.f32 %v1530_v34 }
 0x9ac   :  { %2798 = vpow2.f32 %v2301_v27 }
 0x9b8   :  { %v2797_v33 = vpop.eup %2796 }
 0x9b9   :  { %v1535_v37 = vmul.f32 %v2797_v33, %v3935_v35  ;;  %v2799_v40 = vpop.eup %2798 }
 0x9ba   :  { %v1529_v60 = vadd.f32 1.0, %v2799_v40 }
 0x9bb   :  { %2669 = vmatmul.mubr.f32.vlgmr.msra.gmra.mxu1 %v1535_v37 }
 0x9bc   :  { %2672 = vmatpush3.msra.mxu1 %v3780_v56  ;;  %2703 = vmatprep.mubr.msk.f32.mxu1 %vm2825_vm0, %v4240_v62 }
 0x9bd   :  { %2673 = vmatprep.subr.mxu1 %v4240_v62 }
 0x9be   :  { %2674 = vmatpush3.msra.mxu1 %v3787_v57 }
 0x9bf   :  { %2675 = vmatprep.subr.mxu1 %v4240_v62 }
 0x9c0   :  { %2676 = vmatpush3.msra.mxu1 %v3794_v58 }
 0x9c1   :  { %2677 = vmatprep.subr.mxu1 %v4240_v62 }
 0x9c2   :  { %2678 = vmatpush3.msra.mxu1 %v3801_v20 }
 0x9c3   :  { %2679 = vmatprep.subr.mxu1 %v4240_v62 }
 0x9c4   :  { %2680 = vmatpush3.msra.mxu1 %v3808_v21 }
 0x9c5   :  { %2681 = vmatprep.subr.mxu1 %v4240_v62 }
 0x9c6   :  { %2682 = vmatpush3.msra.mxu1 %v3815_v22 }
 0x9c7   :  { %2683 = vmatprep.subr.mxu1 %v4240_v62 }
 0x9c8   :  { %2684 = vmatpush3.msra.mxu1 %v3822_v23 }
 0x9c9   :  { %2685 = vmatprep.subr.mxu1 %v4240_v62 }
 0x9ca   :  { %2686 = vmatpush3.msra.mxu1 %v3829_v24 }
 0x9cb   :  { %2687 = vmatprep.subr.mxu1 %v4240_v62 }
 0x9cc   :  { %2688 = vmatpush3.msra.mxu1 %v3836_v25 }
 0x9cd   :  { %2689 = vmatprep.subr.mxu1 %v4240_v62 }
 0x9ce   :  { %2690 = vmatpush3.msra.mxu1 %v3841_v26 }
 0x9cf   :  { %2691 = vmatprep.subr.mxu1 %v4240_v62 }
 0x9d0   :  { %2692 = vmatpush3.msra.mxu1 %v3848_v28 }
 0x9d1   :  { %2693 = vmatprep.subr.mxu1 %v4240_v62 }
 0x9d2   :  { %2694 = vmatpush3.msra.mxu1 %v3855_v29 }
 0x9d3   :  { %2695 = vmatprep.subr.mxu1 %v4240_v62 }
 0x9d4   :  { %2696 = vmatpush3.msra.mxu1 %v3862_v30 }
 0x9d5   :  { %2697 = vmatprep.subr.mxu1 %v4240_v62 }
 0x9d6   :  { %2698 = vmatpush3.msra.mxu1 %v3869_v31 }
 0x9d7   :  { %2699 = vmatprep.subr.mxu1 %v4240_v62 }
 0x9d8   :  { %2700 = vmatpush3.msra.mxu1 %v3876_v32 }
 0x9d9   :  { %2701 = vmatprep.subr.mxu1 %v4240_v62 }
 0x9da   :  { %2702 = vmatpush3.msra.mxu1 %v4242_v41 }
 0x9db   :  { %2706 = vmatprep.subr.mxu1 %v4240_v62 }
 0xa7b   :  { %v1618_v54 = vpop.f32.mrf.mxu1 }
 0xa7c   :  { %v1622_v0 = vadd.f32 %v2300_v52, %v1618_v54 }
 0xa7d   :  { %v2670_v55 = vpop.f32.mrf.mxu1 }
 0xa7e   :  { %2800 = vtanh.f32 %v1622_v0 }
 0xa7f   :  { %2802 = vrcp.f32 %v1529_v60 }
 0xa8b   :  { %v2801_v36 = vpop.eup %2800 }
 0xa8c   :  { %v1624_v34 = vsub.f32 %v2801_v36, %v3935_v35  ;;  %v2803_v33 = vpop.eup %2802  ;;  %v2316_v36 = vld [vmem:[%s4234_s0 + $0xa8] sm:$0xff] }
 0xa8e   :  { %v1625_v37 = vmul.f32 %v2803_v33, %v1624_v34 }
 0xa90   :  { %v4050_v53 = vadd.f32 %v1625_v37, %v3935_v35 }
 0xa92   :  { %v1628_v38 = vcombine.high %v4050_v53, %v4050_v53  ;;  %v1635_v39 = vrot.slane %v4050_v53, %v3233_v49  ;;  %1794 = vmatmul.mubr.f32.vlgmr.msra.gmra.mxu0 %v4050_v53 }
 0xa93   :  { %2009 = vmatpush1.msra.mxu0 %v3509_v42  ;;  %2072 = vmatprep.mubr.f32.mxu0 %v4240_v62 }
 0xa94   :  { %v1642_v27 = vrot.slane %v1628_v38, %v3233_v49  ;;  %v1643_v40 = vcombine.high %v1635_v39, %v1635_v39  ;;  %v1651_v52 = vrot.slane %v1635_v39, %v3233_v49  ;;  %2303 = vst.sshfl [vmem:[%s4235_s3 + $0x5] sm:$0x1 pattern:$0x73625140] %v1635_v39  ;;  %2010 = vmatprep.subr.mxu0 %v3514_v43 }
 0xa95   :  { %2011 = vmatpush1.msra.mxu0 %v3520_v44 }
 0xa96   :  { %v1644_v35 = vcombine.high %v1642_v27, %v1642_v27  ;;  %v1658_v54 = vrot.slane %v1642_v27, %v3233_v49  ;;  %v1665_v42 = vrot.slane %v1643_v40, %v3233_v49  ;;  %v1673_v60 = vcombine.high %v1651_v52, %v1651_v52  ;;  %2304 = vst.sshfl [vmem:[%s4235_s3 + $0xd] sm:$0x1 pattern:$0x73625140] %v1643_v40 }
 0xa97   :  { %2305 = vst.sshfl [vmem:[%s4235_s3 + $0x25] sm:$0x1 pattern:$0x73625140] %v1642_v27  ;;  %2012 = vmatprep.subr.mxu0 %v3526_v45 }
 0xa98   :  { %2013 = vmatpush1.msra.mxu0 %v3532_v46  ;;  %v1672_v43 = vrot.slane %v1644_v35, %v3233_v49  ;;  %v1674_v44 = vcombine.high %v1658_v54, %v1658_v54  ;;  %v1675_v0 = vcombine.high %v1665_v42, %v1665_v42  ;;  %1687 = vst [vmem:[%s4235_s3 + $0x15] sm:$0x1] %v1673_v60  ;;  %2306 = vst.sshfl [vmem:[%s4235_s3 + $0x2d] sm:$0x1 pattern:$0x73625140] %v1644_v35 }
 0xa99   :  { %2014 = vmatprep.subr.mxu0 %v3538_v47  ;;  %v2308_v46 = vld [vmem:[%s4234_s0 + $0x98] sm:$0xff] }
 0xa9a   :  { %2015 = vmatpush1.msra.mxu0 %v3544_v48  ;;  %v1676_v55 = vcombine.high %v1672_v43, %v1672_v43  ;;  %1688 = vst [vmem:[%s4235_s3 + $0x1d] sm:$0x1] %v1675_v0  ;;  %1691 = vst [vmem:[%s4235_s3 + $0x35] sm:$0x1] %v1674_v44 }
 0xa9b   :  { %2016 = vmatprep.subr.mxu0 %v3550_v3 }
 0xa9c   :  { %2017 = vmatpush1.msra.mxu0 %v3564_v59  ;;  %1692 = vst [vmem:[%s4235_s3 + $0x3d] sm:$0x1] %v1676_v55 }
 0xa9d   :  { %2018 = vmatprep.subr.mxu0 %v3570_v61 }
 0xa9e   :  { %2019 = vmatpush1.msra.mxu0 %v3576_v1 }
 0xa9f   :  { %2020 = vmatprep.subr.mxu0 %v3582_v63 }
 0xaa0   :  { %2021 = vmatpush1.msra.mxu0 %v3588_v2  ;;  %v2307_v2 = vld [vmem:[%s4234_s0 + $0x90] sm:$0xff] }
 0xaa1   :  { %2022 = vmatprep.subr.mxu0 %v3594_v4 }
 0xaa2   :  { %2023 = vmatpush1.msra.mxu0 %v3600_v50 }
 0xaa3   :  { %2024 = vmatprep.subr.mxu0 %v3606_v51 }
 0xaa4   :  { %2025 = vmatpush1.msra.mxu0 %v3612_v5  ;;  %v2309_v5 = vld [vmem:[%s4234_s0 + $0xa0] sm:$0xff] }
 0xaa5   :  { %2026 = vmatprep.subr.mxu0 %v3618_v6 }
 0xaa6   :  { %2027 = vmatpush1.msra.mxu0 %v3624_v7 }
 0xaa7   :  { %2028 = vmatprep.subr.mxu0 %v3630_v8 }
 0xaa8   :  { %2029 = vmatpush1.msra.mxu0 %v3636_v9 }
 0xaa9   :  { %2030 = vmatprep.subr.mxu0 %v3642_v10 }
 0xaaa   :  { %2031 = vmatpush1.msra.mxu0 %v3648_v11 }
 0xaab   :  { %2032 = vmatprep.subr.mxu0 %v3654_v12 }
 0xaac   :  { %2033 = vmatpush1.msra.mxu0 %v3660_v13 }
 0xaad   :  { %2034 = vmatprep.subr.mxu0 %v3666_v14 }
 0xaae   :  { %2035 = vmatpush1.msra.mxu0 %v3672_v15 }
 0xaaf   :  { %2036 = vmatprep.subr.mxu0 %v3678_v16 }
 0xab0   :  { %2037 = vmatpush1.msra.mxu0 %v3684_v17 }
 0xab1   :  { %2038 = vmatprep.subr.mxu0 %v3689_v18 }
 0xab2   :  { %2039 = vmatpush1.msra.mxu0 %v3694_v19 }
 0xb52   :  { %v1795_v45 = vpop.f32.mrf.mxu0 }
 0xb53   :  { %v1800_v4 = vadd.f32 %v2307_v2, %v1795_v45 }
 0xb54   :  { %v1797_v47 = vpop.f32.mrf.mxu0 }
 0xb55   :  { %v1801_v48 = vadd.f32 %v2308_v46, %v1797_v47  ;;  %v2310_v50 = vmul.f32 -1.442695, %v1800_v4 }
 0xb57   :  { %v2311_v3 = vmul.f32 -1.442695, %v1801_v48 }
 0xb59   :  { %2804 = vpow2.f32 %v2311_v3 }
 0xb66   :  { %v2805_v59 = vpop.eup %2804 }
 0xb67   :  { %v1809_v61 = vadd.f32 1.0, %v2805_v59 }
 0xb69   :  { %2806 = vrcp.f32 %v1809_v61 }
 0xb6a   :  { %2808 = vpow2.f32 %v2310_v50 }
 0xb76   :  { %v2807_v1 = vpop.eup %2806 }
 0xb77   :  { %v1814_v63 = vmul.f32 %v2807_v1, %v4050_v53  ;;  %v2809_v51 = vpop.eup %2808 }
 0xb78   :  { %v1808_v7 = vadd.f32 1.0, %v2809_v51 }
 0xb79   :  { %2704 = vmatmul.mubr.f32.vlgmr.msra.gmra.mxu1 %v1814_v63 }
 0xb7a   :  { %2707 = vmatpush3.msra.mxu1 %v3780_v56  ;;  %2738 = vmatprep.mubr.msk.f32.mxu1 %vm2825_vm0, %v4240_v62 }
 0xb7b   :  { %2708 = vmatprep.subr.mxu1 %v4240_v62 }
 0xb7c   :  { %2709 = vmatpush3.msra.mxu1 %v3787_v57 }
 0xb7d   :  { %2710 = vmatprep.subr.mxu1 %v4240_v62 }
 0xb7e   :  { %2711 = vmatpush3.msra.mxu1 %v3794_v58 }
 0xb7f   :  { %2712 = vmatprep.subr.mxu1 %v4240_v62 }
 0xb80   :  { %2713 = vmatpush3.msra.mxu1 %v3801_v20 }
 0xb81   :  { %2714 = vmatprep.subr.mxu1 %v4240_v62 }
 0xb82   :  { %2715 = vmatpush3.msra.mxu1 %v3808_v21 }
 0xb83   :  { %2716 = vmatprep.subr.mxu1 %v4240_v62 }
 0xb84   :  { %2717 = vmatpush3.msra.mxu1 %v3815_v22 }
 0xb85   :  { %2718 = vmatprep.subr.mxu1 %v4240_v62 }
 0xb86   :  { %2719 = vmatpush3.msra.mxu1 %v3822_v23 }
 0xb87   :  { %2720 = vmatprep.subr.mxu1 %v4240_v62 }
 0xb88   :  { %2721 = vmatpush3.msra.mxu1 %v3829_v24 }
 0xb89   :  { %2722 = vmatprep.subr.mxu1 %v4240_v62 }
 0xb8a   :  { %2723 = vmatpush3.msra.mxu1 %v3836_v25  ;;  %v2317_v25 = vld [vmem:[%s4234_s0 + $0xb0] sm:$0xff] }
 0xb8b   :  { %2724 = vmatprep.subr.mxu1 %v4240_v62 }
 0xb8c   :  { %2725 = vmatpush3.msra.mxu1 %v3841_v26 }
 0xb8d   :  { %2726 = vmatprep.subr.mxu1 %v4240_v62 }
 0xb8e   :  { %2727 = vmatpush3.msra.mxu1 %v3848_v28 }
 0xb8f   :  { %2728 = vmatprep.subr.mxu1 %v4240_v62 }
 0xb90   :  { %2729 = vmatpush3.msra.mxu1 %v3855_v29 }
 0xb91   :  { %2730 = vmatprep.subr.mxu1 %v4240_v62 }
 0xb92   :  { %2731 = vmatpush3.msra.mxu1 %v3862_v30 }
 0xb93   :  { %2732 = vmatprep.subr.mxu1 %v4240_v62 }
 0xb94   :  { %2733 = vmatpush3.msra.mxu1 %v3869_v31 }
 0xb95   :  { %2734 = vmatprep.subr.mxu1 %v4240_v62 }
 0xb96   :  { %2735 = vmatpush3.msra.mxu1 %v3876_v32 }
 0xb97   :  { %2736 = vmatprep.subr.mxu1 %v4240_v62 }
 0xb98   :  { %2737 = vmatpush3.msra.mxu1 %v4242_v41 }
 0xc39   :  { %v1897_v6 = vpop.f32.mrf.mxu1 }
 0xc3a   :  { %v1901_v8 = vadd.f32 %v2309_v5, %v1897_v6 }
 0xc3b   :  { %v2705_v9 = vpop.f32.mrf.mxu1 }
 0xc3c   :  { %2810 = vtanh.f32 %v1901_v8 }
 0xc3d   :  { %2812 = vrcp.f32 %v1808_v7 }
 0xc49   :  { %v2811_v62 = vpop.eup %2810 }
 0xc4a   :  { %v1903_v10 = vsub.f32 %v2811_v62, %v4050_v53  ;;  %v2813_v11 = vpop.eup %2812 }
 0xc4c   :  { %v1904_v12 = vmul.f32 %v2813_v11, %v1903_v10 }
 0xc4e   :  { %v1905_v13 = vadd.f32 %v1904_v12, %v4050_v53  ;;  %v2318_v53 = vld [vmem:[%s4234_s0 + $0xb8] sm:$0xff] }
 0xc50   :  { %v1907_v14 = vcombine.high %v1905_v13, %v1905_v13  ;;  %v1914_v15 = vrot.slane %v1905_v13, %v3233_v49  ;;  %2073 = vmatmul.mubr.f32.vlgmr.msra.gmra.mxu0 %v1905_v13 }
 0xc52   :  { %v1921_v16 = vrot.slane %v1907_v14, %v3233_v49  ;;  %v1922_v17 = vcombine.high %v1914_v15, %v1914_v15  ;;  %v1930_v18 = vrot.slane %v1914_v15, %v3233_v49  ;;  %2312 = vst.sshfl [vmem:[%s4235_s3 + $0x6] sm:$0x1 pattern:$0x73625140] %v1914_v15 }
 0xc54   :  { %v1923_v19 = vcombine.high %v1921_v16, %v1921_v16  ;;  %v1937_v56 = vrot.slane %v1921_v16, %v3233_v49  ;;  %v1944_v57 = vrot.slane %v1922_v17, %v3233_v49  ;;  %v1952_v58 = vcombine.high %v1930_v18, %v1930_v18  ;;  %2313 = vst.sshfl [vmem:[%s4235_s3 + $0xe] sm:$0x1 pattern:$0x73625140] %v1922_v17 }
 0xc55   :  { %2314 = vst.sshfl [vmem:[%s4235_s3 + $0x26] sm:$0x1 pattern:$0x73625140] %v1921_v16 }
 0xc56   :  { %v1951_v20 = vrot.slane %v1923_v19, %v3233_v49  ;;  %v1953_v21 = vcombine.high %v1937_v56, %v1937_v56  ;;  %v1954_v22 = vcombine.high %v1944_v57, %v1944_v57  ;;  %1966 = vst [vmem:[%s4235_s3 + $0x16] sm:$0x1] %v1952_v58  ;;  %2315 = vst.sshfl [vmem:[%s4235_s3 + $0x2e] sm:$0x1 pattern:$0x73625140] %v1923_v19 }
 0xc58   :  { %v1955_v23 = vcombine.high %v1951_v20, %v1951_v20  ;;  %1967 = vst [vmem:[%s4235_s3 + $0x1e] sm:$0x1] %v1954_v22  ;;  %1970 = vst [vmem:[%s4235_s3 + $0x36] sm:$0x1] %v1953_v21 }
 0xc5a   :  { %1971 = vst [vmem:[%s4235_s3 + $0x3e] sm:$0x1] %v1955_v23 }
 0xd10   :  { %v2074_v24 = vpop.f32.mrf.mxu0 }
 0xd11   :  { %v2079_v34 = vadd.f32 %v2316_v36, %v2074_v24 }
 0xd12   :  { %v2076_v26 = vpop.f32.mrf.mxu0 }
 0xd13   :  { %v2080_v28 = vadd.f32 %v2317_v25, %v2076_v26  ;;  %v2319_v33 = vmul.f32 -1.442695, %v2079_v34 }
 0xd15   :  { %v2320_v29 = vmul.f32 -1.442695, %v2080_v28 }
 0xd17   :  { %2814 = vpow2.f32 %v2320_v29 }
 0xd24   :  { %v2815_v30 = vpop.eup %2814 }
 0xd25   :  { %v2088_v31 = vadd.f32 1.0, %v2815_v30 }
 0xd27   :  { %2816 = vrcp.f32 %v2088_v31 }
 0xd28   :  { %2818 = vpow2.f32 %v2319_v33 }
 0xd34   :  { %v2817_v32 = vpop.eup %2816 }
 0xd35   :  { %v2093_v41 = vmul.f32 %v2817_v32, %v1905_v13  ;;  %v2819_v37 = vpop.eup %2818 }
 0xd36   :  { %v2087_v39 = vadd.f32 1.0, %v2819_v37 }
 0xd37   :  { %2739 = vmatmul.mubr.f32.vlgmr.msra.gmra.mxu1 %v2093_v41 }
 0xdf7   :  { %v2176_v38 = vpop.f32.mrf.mxu1 }
 0xdf8   :  { %v2180_v27 = vadd.f32 %v2318_v53, %v2176_v38 }
 0xdf9   :  { %v2740_v40 = vpop.f32.mrf.mxu1 }
 0xdfa   :  { %2820 = vtanh.f32 %v2180_v27 }
 0xdfb   :  { %2822 = vrcp.f32 %v2087_v39 }
 0xe07   :  { %v2821_v52 = vpop.eup %2820 }
 0xe08   :  { %v2182_v35 = vsub.f32 %v2821_v52, %v1905_v13  ;;  %v2823_v54 = vpop.eup %2822 }
 0xe0a   :  { %v2183_v42 = vmul.f32 %v2823_v54, %v2182_v35 }
 0xe0c   :  { %v2184_v60 = vadd.f32 %v2183_v42, %v1905_v13 }
 0xe0e   :  { %v2186_v43 = vcombine.high %v2184_v60, %v2184_v60  ;;  %v2193_v44 = vrot.slane %v2184_v60, %v3233_v49 }
 0xe10   :  { %v2200_v0 = vrot.slane %v2186_v43, %v3233_v49  ;;  %v2201_v55 = vcombine.high %v2193_v44, %v2193_v44  ;;  %v2209_v45 = vrot.slane %v2193_v44, %v3233_v49  ;;  %2321 = vst.sshfl [vmem:[%s4235_s3 + $0x7] sm:$0x1 pattern:$0x73625140] %v2193_v44 }
 0xe12   :  { %v2202_v46 = vcombine.high %v2200_v0, %v2200_v0  ;;  %v2216_v47 = vrot.slane %v2200_v0, %v3233_v49  ;;  %v2223_v48 = vrot.slane %v2201_v55, %v3233_v49  ;;  %v2231_v3 = vcombine.high %v2209_v45, %v2209_v45  ;;  %2322 = vst.sshfl [vmem:[%s4235_s3 + $0xf] sm:$0x1 pattern:$0x73625140] %v2201_v55 }
 0xe13   :  { %2323 = vst.sshfl [vmem:[%s4235_s3 + $0x27] sm:$0x1 pattern:$0x73625140] %v2200_v0 }
 0xe14   :  { %v2230_v59 = vrot.slane %v2202_v46, %v3233_v49  ;;  %v2232_v61 = vcombine.high %v2216_v47, %v2216_v47  ;;  %v2233_v1 = vcombine.high %v2223_v48, %v2223_v48  ;;  %2245 = vst [vmem:[%s4235_s3 + $0x17] sm:$0x1] %v2231_v3  ;;  %2324 = vst.sshfl [vmem:[%s4235_s3 + $0x2f] sm:$0x1 pattern:$0x73625140] %v2202_v46 }
 0xe16   :  { %v2234_v63 = vcombine.high %v2230_v59, %v2230_v59  ;;  %2246 = vst [vmem:[%s4235_s3 + $0x1f] sm:$0x1] %v2233_v1  ;;  %2249 = vst [vmem:[%s4235_s3 + $0x37] sm:$0x1] %v2232_v61 }
 0xe18   :  { %2250 = vst [vmem:[%s4235_s3 + $0x3f] sm:$0x1] %v2234_v63 }

</bundles_post_ra>
